<compile_context>
chip_gen: v5e
topology: v5e:2x2
jax: 0.10.0
libtpu: 0.0.40
codegen_flags: <defaults>
</compile_context>

<pallas_src>
import jax
import jax.numpy as jnp
from jax.experimental import pallas as pl
from jax.experimental.pallas import tpu as pltpu

IN_DIM = 768
HID_DIM = 512
OUT_DIM = 100        # logical output width (nn.Linear(512, 100))
OUT_DIM_PAD = 128    # lane-dense padded width (multiple of 128)


def _round_up(x, m):
    return ((x + m - 1) // m) * m


def mlp_kernel(x_ref, w1_ref, b1_ref, w2_ref, b2_ref, o_ref):
    # Fused Linear(768->512) + ReLU + Linear(512->128 padded) on one batch tile.
    x = x_ref[...]
    h = jnp.dot(x, w1_ref[...], preferred_element_type=jnp.float32) + b1_ref[...]
    h = jnp.maximum(h, 0.0)
    y = jnp.dot(h.astype(x.dtype), w2_ref[...],
                preferred_element_type=jnp.float32) + b2_ref[...]
    o_ref[...] = y.astype(o_ref.dtype)


def prepare_params(w1, b1, w2, b2, dtype=jnp.float32):
    """One-time weight preprocessing, hoisted out of the per-call forward path.

    Casts W1/W2 to the activation dtype (use jnp.bfloat16 for bf16 MXU operands),
    keeps biases in f32 (they add onto the f32 accumulators), and zero-pads the
    output feature dim 100 -> 128 for lane-dense stores. Call once and reuse.
    """
    w1c = jnp.asarray(w1, dtype).reshape(IN_DIM, HID_DIM)
    b1c = jnp.asarray(b1, jnp.float32).reshape(1, HID_DIM)
    w2c = jnp.asarray(w2, dtype).reshape(HID_DIM, OUT_DIM)
    b2c = jnp.asarray(b2, jnp.float32).reshape(1, OUT_DIM)
    w2p = jnp.zeros((HID_DIM, OUT_DIM_PAD), dtype).at[:, :OUT_DIM].set(w2c)
    b2p = jnp.zeros((1, OUT_DIM_PAD), jnp.float32).at[:, :OUT_DIM].set(b2c)
    return w1c, b1c, w2p, b2p


def question_network_forward(question_emb, params, *, tile_b=None):
    """Forward of QuestionNetwork.linear_relu_stack.

    question_emb: [B, 768]; params: output of prepare_params().
    Returns [B, 100] in question_emb.dtype.
    """
    w1c, b1c, w2p, b2p = params
    B, D = question_emb.shape
    assert D == IN_DIM
    dtype = question_emb.dtype
    assert w1c.dtype == dtype and w2p.dtype == dtype, (
        "prepare_params dtype must match the activation dtype")
    itemsize = jnp.dtype(dtype).itemsize

    # Packed sublane granularity: f32 vregs are [8,128], bf16 [16,128], int8 [32,128].
    sub = max(8, 32 // itemsize)

    # Batch tile: big enough to amortize per-grid-step overhead / feed MXU rows,
    # rounded to the sublane pack, and clamped so mid-size batches still give
    # >=2 grid steps (lets dimension_semantics=("parallel",) use both v7x TCs).
    if tile_b is None:
        tile_b = 512 if itemsize >= 4 else 1024
    tile_b = max(sub, (int(tile_b) // sub) * sub)
    tile_b = min(tile_b, _round_up(B, sub))
    tile_b = min(tile_b, _round_up(pl.cdiv(B, 2), sub))
    grid_b = pl.cdiv(B, tile_b)

    # Advisory cost estimate for XLA's scheduler.
    flops = 2 * B * (IN_DIM * HID_DIM + HID_DIM * OUT_DIM_PAD)
    bytes_accessed = (
        B * IN_DIM * itemsize
        + (IN_DIM * HID_DIM + HID_DIM * OUT_DIM_PAD) * itemsize
        + (HID_DIM + OUT_DIM_PAD) * 4
        + B * OUT_DIM_PAD * itemsize
    )
    cost = pl.CostEstimate(flops=flops, transcendentals=0,
                           bytes_accessed=bytes_accessed)

    # VMEM footprint estimate (double-buffered x/out tiles + weights + f32 hidden).
    vmem_est = (
        2 * tile_b * IN_DIM * itemsize
        + 2 * tile_b * OUT_DIM_PAD * itemsize
        + 2 * (IN_DIM * HID_DIM + HID_DIM * OUT_DIM_PAD) * itemsize
        + 2 * (HID_DIM + OUT_DIM_PAD) * 4
        + tile_b * HID_DIM * 4
    )
    compiler_kwargs = dict(dimension_semantics=("parallel",))
    if vmem_est > 16 * 1024 * 1024:  # v5e scoped-VMEM default is 16 MiB
        compiler_kwargs["vmem_limit_bytes"] = int(vmem_est * 5 // 4)

    out_padded = pl.pallas_call(
        mlp_kernel,
        out_shape=jax.ShapeDtypeStruct((B, OUT_DIM_PAD), dtype),
        grid_spec=pltpu.PrefetchScalarGridSpec(
            num_scalar_prefetch=0,
            grid=(grid_b,),
            in_specs=[
                pl.BlockSpec((tile_b, IN_DIM), lambda i: (i, 0)),       # x tile (ragged edge ok)
                pl.BlockSpec((IN_DIM, HID_DIM), lambda i: (0, 0)),      # W1 (resident)
                pl.BlockSpec((1, HID_DIM), lambda i: (0, 0)),           # b1
                pl.BlockSpec((HID_DIM, OUT_DIM_PAD), lambda i: (0, 0)), # W2 (resident, padded)
                pl.BlockSpec((1, OUT_DIM_PAD), lambda i: (0, 0)),       # b2 (padded)
            ],
            out_specs=pl.BlockSpec((tile_b, OUT_DIM_PAD), lambda i: (i, 0)),
        ),
        compiler_params=pltpu.CompilerParams(**compiler_kwargs),
        cost_estimate=cost,
    )(question_emb, w1c, b1c, w2p, b2p)

    # Only the 128->100 column slice remains (100 is not lane-aligned);
    # no batch-row padding or slicing anywhere.
    return out_padded[:, :OUT_DIM]


def init_params(key):
    k1, k2, k3, k4 = jax.random.split(key, 4)
    # PyTorch-style uniform init, bound 1/sqrt(fan_in).
    bound1 = 1.0 / (IN_DIM ** 0.5)
    bound2 = 1.0 / (HID_DIM ** 0.5)
    w1 = jax.random.uniform(k1, (IN_DIM, HID_DIM), jnp.float32, -bound1, bound1)
    b1 = jax.random.uniform(k2, (1, HID_DIM), jnp.float32, -bound1, bound1)
    w2 = jax.random.uniform(k3, (HID_DIM, OUT_DIM), jnp.float32, -bound2, bound2)
    b2 = jax.random.uniform(k4, (1, OUT_DIM), jnp.float32, -bound2, bound2)
    return w1, b1, w2, b2


# TODO(synk): kge_model scoring + BCE training utilities (train_model,
# custom_loss_function) are host-side training code, not part of the forward pass.

if __name__ == "__main__":
    key = jax.random.PRNGKey(0)
    k_x, k_p = jax.random.split(key)

    # Small batch, deliberately not a multiple of the tile so the ragged edge
    # block (masked stores) and the >=2-step parallel grid are both exercised.
    B = 24
    question_emb = jax.random.normal(k_x, (B, IN_DIM), jnp.float32)
    w1, b1, w2, b2 = init_params(k_p)

    # f32 path + reference check.
    params_f32 = prepare_params(w1, b1, w2, b2, jnp.float32)
    out = question_network_forward(question_emb, params_f32)
    out = jax.block_until_ready(out)

    ref = jnp.maximum(question_emb @ w1 + b1, 0.0) @ w2 + b2
    assert out.shape == (B, OUT_DIM)
    assert jnp.allclose(out, ref, atol=1e-4, rtol=1e-4)

    # bf16 operand path (f32 accumulation stays inside the kernel) — smoke test.
    params_bf16 = prepare_params(w1, b1, w2, b2, jnp.bfloat16)
    out_bf16 = question_network_forward(question_emb.astype(jnp.bfloat16), params_bf16)
    out_bf16 = jax.block_until_ready(out_bf16)
    assert out_bf16.shape == (B, OUT_DIM)
    assert bool(jnp.all(jnp.isfinite(out_bf16.astype(jnp.float32))))

    print("KERNEL_OK")
</pallas_src>

<mosaic_0001>
module attributes {stable_mosaic.version = 11 : i64} {
  func.func @mlp_kernel(%arg0: i32, %arg1: memref<16x768xf32, #tpu.memory_space<vmem>>, %arg2: memref<768x512xf32, #tpu.memory_space<vmem>>, %arg3: memref<1x512xf32, #tpu.memory_space<vmem>>, %arg4: memref<512x128xf32, #tpu.memory_space<vmem>>, %arg5: memref<1x128xf32, #tpu.memory_space<vmem>>, %arg6: memref<16x128xf32, #tpu.memory_space<vmem>>) attributes {dimension_semantics = [#tpu.dimension_semantics<parallel>], iteration_bounds = array<i64: 2>, scalar_prefetch = 0 : i64, scratch_operands = 0 : i64, tpu.core_type = #tpu.core_type<tc>, window_params = [{transform_indices = @transform_0, window_bounds = array<i64: 16, 768>}, {pipeline_mode = #tpu.pipeline_mode<synchronous>, transform_indices = @transform_1, window_bounds = array<i64: 768, 512>}, {pipeline_mode = #tpu.pipeline_mode<synchronous>, transform_indices = @transform_2, window_bounds = array<i64: 1, 512>}, {pipeline_mode = #tpu.pipeline_mode<synchronous>, transform_indices = @transform_3, window_bounds = array<i64: 512, 128>}, {pipeline_mode = #tpu.pipeline_mode<synchronous>, transform_indices = @transform_4, window_bounds = array<i64: 1, 128>}, {transform_indices = @transform_5, window_bounds = array<i64: 16, 128>}]} {
    %c0 = arith.constant 0 : index
    %c0_0 = arith.constant 0 : index
    %0 = vector.load %arg1[%c0, %c0_0] : memref<16x768xf32, #tpu.memory_space<vmem>>, vector<16x768xf32>
    %c0_1 = arith.constant 0 : index
    %c0_2 = arith.constant 0 : index
    %1 = vector.load %arg2[%c0_1, %c0_2] : memref<768x512xf32, #tpu.memory_space<vmem>>, vector<768x512xf32>
    %cst = arith.constant dense<0.000000e+00> : vector<16x512xf32>
    %2 = tpu.matmul %0, %1, %cst {dimension_numbers = #tpu.dot_dimension_numbers<[1], [0], [0], [1], [0, 0, 1, 1], [], []>} : vector<16x768xf32>, vector<768x512xf32>, vector<16x512xf32> -> vector<16x512xf32>
    %c0_3 = arith.constant 0 : index
    %c0_4 = arith.constant 0 : index
    %3 = vector.load %arg3[%c0_3, %c0_4] : memref<1x512xf32, #tpu.memory_space<vmem>>, vector<1x512xf32>
    %4 = vector.broadcast %3 : vector<1x512xf32> to vector<16x512xf32>
    %5 = arith.addf %2, %4 : vector<16x512xf32>
    %cst_5 = arith.constant 0.000000e+00 : f32
    %6 = vector.broadcast %cst_5 : f32 to vector<16x512xf32>
    %7 = arith.maximumf %5, %6 : vector<16x512xf32>
    %c0_6 = arith.constant 0 : index
    %c0_7 = arith.constant 0 : index
    %8 = vector.load %arg4[%c0_6, %c0_7] : memref<512x128xf32, #tpu.memory_space<vmem>>, vector<512x128xf32>
    %cst_8 = arith.constant dense<0.000000e+00> : vector<16x128xf32>
    %9 = tpu.matmul %7, %8, %cst_8 {dimension_numbers = #tpu.dot_dimension_numbers<[1], [0], [0], [1], [0, 0, 1, 1], [], []>} : vector<16x512xf32>, vector<512x128xf32>, vector<16x128xf32> -> vector<16x128xf32>
    %c0_9 = arith.constant 0 : index
    %c0_10 = arith.constant 0 : index
    %10 = vector.load %arg5[%c0_9, %c0_10] : memref<1x128xf32, #tpu.memory_space<vmem>>, vector<1x128xf32>
    %11 = vector.broadcast %10 : vector<1x128xf32> to vector<16x128xf32>
    %12 = arith.addf %9, %11 : vector<16x128xf32>
    %c0_11 = arith.constant 0 : index
    %c0_12 = arith.constant 0 : index
    %13 = vector.load %arg6[%c0_11, %c0_12] : memref<16x128xf32, #tpu.memory_space<vmem>>, vector<16x128xf32>
    tpu.vector_store %arg6[%c0_11, %c0_12], %12 {strides = array<i32>} : memref<16x128xf32, #tpu.memory_space<vmem>>, vector<16x128xf32>,
    return
  }
  func.func @transform_0(%arg0: i32) -> (i32, i32) {
    %c0_i32 = arith.constant 0 : i32
    %c0_i32_0 = arith.constant 0 : i32
    return %arg0, %c0_i32 : i32, i32
  }
  func.func @transform_1(%arg0: i32) -> (i32, i32) {
    %c0_i32 = arith.constant 0 : i32
    %c0_i32_0 = arith.constant 0 : i32
    %c0_i32_1 = arith.constant 0 : i32
    return %c0_i32, %c0_i32_0 : i32, i32
  }
  func.func @transform_2(%arg0: i32) -> (i32, i32) {
    %c0_i32 = arith.constant 0 : i32
    %c0_i32_0 = arith.constant 0 : i32
    %c0_i32_1 = arith.constant 0 : i32
    return %c0_i32, %c0_i32_0 : i32, i32
  }
  func.func @transform_3(%arg0: i32) -> (i32, i32) {
    %c0_i32 = arith.constant 0 : i32
    %c0_i32_0 = arith.constant 0 : i32
    %c0_i32_1 = arith.constant 0 : i32
    return %c0_i32, %c0_i32_0 : i32, i32
  }
  func.func @transform_4(%arg0: i32) -> (i32, i32) {
    %c0_i32 = arith.constant 0 : i32
    %c0_i32_0 = arith.constant 0 : i32
    %c0_i32_1 = arith.constant 0 : i32
    return %c0_i32, %c0_i32_0 : i32, i32
  }
  func.func @transform_5(%arg0: i32) -> (i32, i32) {
    %c0_i32 = arith.constant 0 : i32
    %c0_i32_0 = arith.constant 0 : i32
    return %arg0, %c0_i32 : i32, i32
  }
}

</mosaic_0001>

<bundles_post_ra>
// kernel: tpu_custom_call.1
= control target key start
LH: loop header
LB: loop body
LE: loop exit
PB: predicated region body
PF: predicated region fallthrough
CT: control target
= control target key end

     0   :  { %s2360_s0 = inlined_call_operand.hbm [shape: f32[24,768], index: 0, kind: input, shape index: {}]   ;;  %s2361_s1 = inlined_call_operand.hbm [shape: f32[768,512], index: 1, kind: input, shape index: {}]   ;;  %s2362_s2 = inlined_call_operand.hbm [shape: f32[1,512], index: 2, kind: input, shape index: {}]   ;;  %s2363_s3 = inlined_call_operand.hbm [shape: f32[512,128], index: 3, kind: input, shape index: {}]   ;;  %s2364_s4 = inlined_call_operand.hbm [shape: f32[1,128], index: 4, kind: input, shape index: {}]   ;;  %s2365_s5 = inlined_call_operand.hbm [shape: f32[24,128], index: 5, kind: output, shape index: {}]  }
   0x1   :  { %2371 = sst [smem:[#allocation19_spill]] %s2361_s1 }
   0x2   :  { %2372 = sst [smem:[#allocation20_spill]] %s2363_s3 }
   0x3   :  { %10 = vsyncpa [#allocation3], 0 }
   0x4   :  { %12 = vsyncpa [#allocation3 + $0x1], 0 }
   0x5   :  { %13 = vsyncpa [#allocation6], 0 }
   0x6   :  { %14 = vsyncpa [#allocation9], 0 }
   0x7   :  { %15 = vsyncpa [#allocation4], 0 }
   0x8   :  { %17 = vsyncpa [#allocation4 + $0x1], 0  ;;  %s2011_s18 = smov 0   ;;  %s2013_s19 = smov 0  }
   0x9   :  { %s2015_s20 = smov 0   ;;  %s2017_s21 = smov 0  }
   0xa LB: > { %s2032_s22 = sadd.s32 4294967295, %s1965_s21   ;;  %s1589_s23 = sadd.s32 4294967294, %s1965_s21   ;;  %s1965_s21 = sphi %s2017_s21, %s2393_s21   ;;  %s1961_s20 = sphi %s2015_s20, %s2397_s20   ;;  %s1957_s19 = sphi %s2013_s19, %s2396_s19   ;;  %s1953_s18 = sphi %s2011_s18, %s2395_s18  }
   0xb   : > { %s2036_s24 = sadd.s32 1, %s1965_s21   ;;  %s30_s25 = sadd.s32 1, %s1961_s20 }
   0xc   : > { %2373 = sst [smem:[#allocation16_spill]] %s2036_s24  ;;  %s27_s26 = ssub.s32 %s1965_s21, %s2036_s24 }
   0xd   : > { %p37_p0 = scmp.ne.s32.totalorder %s1961_s20, %s1957_s19  ;;  %p28_p1 = scmp.eq.s32.totalorder %s27_s26, 0 }
   0xe   : > { %p38_p2 = scmp.eq.s32.totalorder %s1965_s21, 0  ;;  %p43_p3 = scmp.ne.s32.totalorder %s1957_s19, %s1953_s18 }
   0xf   : > { %p2370_p4 = scmp.eq.s32.totalorder %s2032_s22, 0  ;;  %p151_p7 = scmp.eq.s32.totalorder %s2032_s22, 1 }
  0x10   : > { %s2048_s27 = scalar_select %p28_p1, %s1961_s20, %s30_s25  }
  0x11   : > { %p2050_p5 = por %p38_p2, %p37_p0  ;;  %p2056_p6 = por %p2370_p4, %p43_p3 }
  0x12   : > { %2374 = sst [smem:[#allocation17_spill]] %s2048_s27  ;;  %p157_p8 = scmp.eq.s32.totalorder %s1589_s23, 1 }
  0x13   : > { %p1590_p9 = scmp.ge.s32.totalorder %s1965_s21, 1  ;;  %p164_p10 = scmp.lt.s32.totalorder %s1965_s21, 3 }
  0x14   : > { %p2063_p11 = por %p151_p7, %p37_p0  ;;  %p2067_p12 = por %p157_p8, %p43_p3 }
  0x15   : > { %p2071_p13 = pnand %p1590_p9, %p164_p10  ;;  %s2381_s1 = sld [smem:[#allocation19_spill]] }
  0x16   : > { %s2378_s6 = scalar_select %p2067_p12, 1, 0 }
  0x17   : > { %p1640_p1 = pneg %p2071_p13  ;;  %s1967_s11 = smov [#allocation5]  }
  0x18   : > { %2379 = sst [smem:[#allocation18_spill]] %s2378_s6  ;;  %s177_s12 = sshll.u32 %s1967_s11, 4  ;;  %s178_s12 = int_to_ptr.vmem [resolvable:$true] %s177_s12 }
  0x19   : > { %p2082_p0 = pnand %p1640_p1, %p2370_p4  ;;  %s2383_s3 = sld [smem:[#allocation20_spill]] }
  0x1a   : > { %s1968_s17 = smov 512   ;;  %s1969_s23 = smov 32  }
  0x1b   : > { %s175_s10 = sshll.u32 %s2381_s1, 4  ;;  %s1970_s25 = smov [#allocation8]   ;;  %s176_s10 = int_to_ptr.hbm [resolvable:$true] %s175_s10 }
  0x1c   : > { %1643 = dma.hbm_to_vmem [thread:$0]  (!%p2082_p0), %s176_s10, 49152, %s178_s12, [#allocation6], %s1968_s17, %s1968_s17, %s1969_s23  }
  0x1d   : > { %s203_s26 = sshll.u32 %s1970_s25, 4  ;;  %s190_s11 = sshll.u32 %s2362_s2, 4  ;;  %s204_s26 = int_to_ptr.vmem [resolvable:$true] %s203_s26  ;;  %s191_s11 = int_to_ptr.hbm [resolvable:$true] %s190_s11 }
  0x1e   : > { %s1971_s1 = smov 128   ;;  %s1972_s27 = smov 8  }
  0x1f   : > { %s201_s16 = sshll.u32 %s2383_s3, 4  ;;  %s1973_s14 = smov [#allocation7]   ;;  %s202_s16 = int_to_ptr.hbm [resolvable:$true] %s201_s16 }
  0x20   : > { %1649 = dma.hbm_to_vmem [thread:$0]  (!%p2082_p0), %s202_s16, 8192, %s204_s26, [#allocation9], %s1971_s1, %s1971_s1, %s1972_s27  }
  0x21   : > { %s192_s15 = sshll.u32 %s1973_s14, 4  ;;  %s216_s6 = sshll.u32 %s2364_s4, 4  ;;  %s193_s15 = int_to_ptr.vmem [resolvable:$true] %s192_s15  ;;  %s217_s6 = int_to_ptr.hbm [resolvable:$true] %s216_s6 }
  0x22   : > { %1646 = dma.hbm_to_vmem [thread:$0]  (!%p2082_p0), %s191_s11, 64, %s193_s15, [#allocation6]  }
  0x23   : > { %s1974_s10 = smov [#allocation10]   ;;  %p2369_p2 = scmp.ge.s32.totalorder %s1965_s21, 2 }
  0x24   : > { %s218_s12 = sshll.u32 %s1974_s10, 4  ;;  %s219_s12 = int_to_ptr.vmem [resolvable:$true] %s218_s12 }
  0x25   : > { %1652 = dma.hbm_to_vmem [thread:$0]  (!%p2082_p0), %s217_s6, 16, %s219_s12, [#allocation9]  }
  0x26   : > { %225 = sbr.rel (%p2369_p2) target bundleno = 84 (0x54), region = 32 }
  0x2b   : > { %228 = sbr.rel (!%p2050_p5) target bundleno = 84 (0x54), region = 36  ;;  %s229_s1 = sand.u32 (%p2050_p5), 1, %s1961_s20  }
  0x2c   : > { %s1596_s3 = sshll.u32 (%p2050_p5), %s1965_s21, 1  ;;  %s1619_s24 = smul.u32 (%p2050_p5), 96, %s229_s1 }
  0x2d   : > { %s235_s27 = ssub.s32 (%p2050_p5), 3, %s1596_s3  ;;  %s2110_s6 = scalar_lea.sflag (%p2050_p5), [#allocation3], %s229_s1 }
  0x2e   : > { %p236_p3 = scmp.lt.s32.totalorder (%p2050_p5), %s235_s27, 2  ;;  %s233_s23 = scalar_lea.vmem (%p2050_p5), [#allocation2], %s1619_s24 }
  0x30   : > { %s2399_s27 = smov (!%p236_p3, %s235_s27), 2 }
  0x31   : > { %s1598_s16 = smul.u32 48, %s2399_s27 }
  0x33   : > { %s240_s17 = ssub.s32 96, %s1598_s16 }
  0x34   : > { %s241_s13 = sshll.u32 %s240_s17, 4 }
  0x35   : > { %242 = vsyncadd %s2110_s6, %s241_s13  ;;  %p2113_p7 = scmp.ne.s32.totalorder %s1598_s16, 0  ;;  %s1620_s25 = smul.u32 96, %s1965_s21 }
  0x36   : > { %s2118_s26 = sshll.u32 %s233_s23, 4  ;;  %s2120_s8 = smul.u32 768, %s2399_s27  ;;  %s251_s26 = int_to_ptr.vmem [resolvable:$true] %s2118_s26 }
  0x37   : > { %s246_s14 = scalar_lea.hbm %s2360_s0, %s1620_s25  ;;  %s1852_s17 = scalar_lea.hbm %s2360_s0, 144 }
  0x38   : > { %s248_s15 = sshll.u32 %s246_s14, 4  ;;  %s1843_s12 = sshrl.u32 %s2120_s8, 4  ;;  %s2126_s15 = int_to_ptr.hbm [resolvable:$true] %s248_s15 }
  0x39   : > { %s1841_s10 = sshra.s32 %s2126_s15, 4  ;;  %s1879_s1 = sshll.u32 %s1843_s12, 4  ;;  %s1842_s10 = int_to_ptr.hbm [resolvable:$true] %s1841_s10 }
  0x3a   : > { %p1845_p5 = scmp.ne.s32.totalorder %s1879_s1, %s2120_s8  ;;  %s1846_s3 = sadd.s32 1, %s1843_s12 }
  0x3b   : > { %p1853_p1 = scmp.lt.s32.totalorder %s1842_s10, %s2360_s0 }
  0x3c   : > { %s2401_s3 = smov (!%p1845_p5, %s1846_s3), %s1843_s12 }
  0x3d   : > { %s1848_s24 = scalar_lea.hbm %s1842_s10, %s2401_s3 }
  0x3e   : > { %p1849_p8 = scmp.ne.s32.totalorder %s1842_s10, %s1848_s24  ;;  %p1854_p0 = scmp.lt.s32.totalorder %s1852_s17, %s1848_s24 }
  0x40   : > { %p1850_p9 = pnand %p1849_p8, %p2113_p7  ;;  %p1855_p3 = por %p1854_p0, %p1853_p1 }
  0x42   : > { %p1851_p10 = pneg %p1850_p9 }
  0x44   : > { %p1856_p2 = pnand %p1855_p3, %p1851_p10 }
  0x46   : > { %1859 = shalt.err (!%p1856_p2)
}
  0x47   : > { %s1860_s25 = sshra.s32 %s251_s26, 4  ;;  %s1975_s11 = smov [#allocation2]   ;;  %s1861_s25 = int_to_ptr.vmem [resolvable:$true] %s1860_s25 }
  0x48   : > { %s1867_s9 = scalar_lea.vmem %s1861_s25, %s2401_s3  ;;  %s1871_s14 = scalar_lea.vmem %s1975_s11, 192 }
  0x49   : > { %p1868_p5 = scmp.ne.s32.totalorder %s1861_s25, %s1867_s9  ;;  %p1873_p4 = scmp.lt.s32.totalorder %s1871_s14, %s1867_s9 }
  0x4b   : > { %p1869_p8 = pnand %p1868_p5, %p2113_p7 }
  0x4d   : > { %p1870_p9 = pneg %p1869_p8 }
  0x4f   : > { %p1875_p12 = pnand %p1873_p4, %p1870_p9 }
  0x51   : > { %1878 = shalt.err (!%p1875_p12)
}
  0x52   : > { %s1976_s10 = smov 768   ;;  %s1977_s12 = smov 48  }
  0x53   : > { %256 = dma.hbm_to_vmem [thread:$0]  (%p2113_p7), %s2126_s15, %s2120_s8, %s251_s26, %s2110_s6, %s1976_s10, %s1976_s10, %s1977_s12  }
  0x54 PF: > { %262 = sbr.rel (%p2071_p13) target bundleno = 652 (0x28c), region = 40  ;;  %s2153_s1 = sand.u32 (!%p2071_p13), 1, %s1957_s19  }
  0x55   : > { %s1621_s3 = smul.u32 (!%p2071_p13), 96, %s2153_s1  ;;  %s265_s24 = scalar_lea.sflag (!%p2071_p13), [#allocation3], %s2153_s1 }
  0x57   : > { %s2157_s27 = scalar_lea.vmem (!%p2071_p13), [#allocation2], %s1621_s3 }
  0x59   : > { %1936 = dma.done.wait (%p2056_p6), %s265_s24, 1536  }
  0x5a   : > { %1938 = vsyncadd (%p2056_p6), %s265_s24, 4294965760  ;;  %p2385_p4 = scmp.eq.s32.totalorder %s2032_s22, 0 }
  0x5c   : > { %1940 = dma.done.wait (%p2385_p4), [#allocation6], 49216   ;;  %p2386_p12 = pmov %p2385_p4 }
  0x5d   : > { %p2387_p13 = pmov %p2385_p4 }
  0x5e   : > { %1942 = vsyncadd (%p2386_p12), [#allocation6], 4294918080 }
  0x5f   : > { %1944 = dma.done.wait (%p2387_p13), [#allocation9], 8208   ;;  %p2388_p2 = pmov %p2385_p4 }
  0x60   : > { %v399_v0 = vld [vmem:[#allocation5 + $0x1e0] sm:$0xff]  ;;  %v400_v63 = vld [vmem:[#allocation5 + $0x1e8] sm:$0xff]  ;;  %s1608_s29 = sshll.u32 %s2153_s1, 4  ;;  %s1456_s6 = scalar_lea.sflag [#allocation4], %s2153_s1 }
  0x61   : > { %1946 = vsyncadd (%p2388_p2), [#allocation9], 4294959088  ;;  %v527_v1 = vld [vmem:[#allocation5 + $0x5e0] sm:$0xff]  ;;  %733 = vmatpush.msra.mxu0 %v399_v0  ;;  %s315_s7 = scalar_lea.vmem [#allocation11], %s1608_s29  ;;  %s1610_s28 = sshll.u32 (%p2063_p11), %s2032_s22, 1 }
  0x62   : > { %v395_v2 = vld [vmem:[#allocation5 + $0x1c0] sm:$0xff]  ;;  %779 = vmatpush.msra.mxu2 %v527_v1  ;;  %s1464_s26 = ssub.s32 (%p2063_p11), 3, %s1610_s28 }
  0x63   : > { %v463_v3 = vld [vmem:[#allocation5 + $0x3e0] sm:$0xff]  ;;  %734 = vmatpush.msra.mxu0 %v395_v2  ;;  %p1465_p6 = scmp.lt.s32.totalorder (%p2063_p11), %s1464_s26, 2 }
  0x64   : > { %v523_v4 = vld [vmem:[#allocation5 + $0x5c0] sm:$0xff]  ;;  %756 = vmatpush.msra.mxu1 %v463_v3 }
  0x65   : > { %v591_v5 = vld [vmem:[#allocation5 + $0x7e0] sm:$0xff]  ;;  %780 = vmatpush.msra.mxu2 %v523_v4  ;;  %v396_v4 = vld [vmem:[#allocation5 + $0x1c8] sm:$0xff] }
  0x66   : > { %802 = vmatpush.msra.mxu3 %v591_v5  ;;  %v391_v6 = vld [vmem:[#allocation5 + $0x1a0] sm:$0xff]  ;;  %v464_v5 = vld [vmem:[#allocation5 + $0x3e8] sm:$0xff] }
  0x67   : > { %v459_v7 = vld [vmem:[#allocation5 + $0x3c0] sm:$0xff]  ;;  %735 = vmatpush.msra.mxu0 %v391_v6 }
  0x68   : > { %v519_v8 = vld [vmem:[#allocation5 + $0x5a0] sm:$0xff]  ;;  %757 = vmatpush.msra.mxu1 %v459_v7 }
  0x69   : > { %v587_v9 = vld [vmem:[#allocation5 + $0x7c0] sm:$0xff]  ;;  %781 = vmatpush.msra.mxu2 %v519_v8  ;;  %v392_v8 = vld [vmem:[#allocation5 + $0x1a8] sm:$0xff] }
  0x6a   : > { %v455_v10 = vld [vmem:[#allocation5 + $0x3a0] sm:$0xff]  ;;  %803 = vmatpush.msra.mxu3 %v587_v9  ;;  %v460_v9 = vld [vmem:[#allocation5 + $0x3c8] sm:$0xff] }
  0x6b   : > { %v387_v11 = vld [vmem:[#allocation5 + $0x180] sm:$0xff]  ;;  %758 = vmatpush.msra.mxu1 %v455_v10 }
  0x6c   : > { %v515_v12 = vld [vmem:[#allocation5 + $0x580] sm:$0xff]  ;;  %736 = vmatpush.msra.mxu0 %v387_v11 }
  0x6d   : > { %v583_v13 = vld [vmem:[#allocation5 + $0x7a0] sm:$0xff]  ;;  %782 = vmatpush.msra.mxu2 %v515_v12  ;;  %v388_v12 = vld [vmem:[#allocation5 + $0x188] sm:$0xff] }
  0x6e   : > { %v451_v14 = vld [vmem:[#allocation5 + $0x380] sm:$0xff]  ;;  %804 = vmatpush.msra.mxu3 %v583_v13  ;;  %v456_v13 = vld [vmem:[#allocation5 + $0x3a8] sm:$0xff] }
  0x6f   : > { %v579_v15 = vld [vmem:[#allocation5 + $0x780] sm:$0xff]  ;;  %759 = vmatpush.msra.mxu1 %v451_v14 }
  0x70   : > { %v383_v16 = vld [vmem:[#allocation5 + $0x160] sm:$0xff]  ;;  %805 = vmatpush.msra.mxu3 %v579_v15 }
  0x71   : > { %v511_v17 = vld [vmem:[#allocation5 + $0x560] sm:$0xff]  ;;  %737 = vmatpush.msra.mxu0 %v383_v16  ;;  %v384_v16 = vld [vmem:[#allocation5 + $0x168] sm:$0xff] }
  0x72   : > { %v447_v18 = vld [vmem:[#allocation5 + $0x360] sm:$0xff]  ;;  %783 = vmatpush.msra.mxu2 %v511_v17  ;;  %v452_v17 = vld [vmem:[#allocation5 + $0x388] sm:$0xff] }
  0x73   : > { %v575_v19 = vld [vmem:[#allocation5 + $0x760] sm:$0xff]  ;;  %760 = vmatpush.msra.mxu1 %v447_v18 }
  0x74   : > { %v379_v20 = vld [vmem:[#allocation5 + $0x140] sm:$0xff]  ;;  %806 = vmatpush.msra.mxu3 %v575_v19 }
  0x75   : > { %v507_v21 = vld [vmem:[#allocation5 + $0x540] sm:$0xff]  ;;  %738 = vmatpush.msra.mxu0 %v379_v20  ;;  %v380_v20 = vld [vmem:[#allocation5 + $0x148] sm:$0xff] }
  0x76   : > { %v443_v22 = vld [vmem:[#allocation5 + $0x340] sm:$0xff]  ;;  %784 = vmatpush.msra.mxu2 %v507_v21  ;;  %v448_v21 = vld [vmem:[#allocation5 + $0x368] sm:$0xff] }
  0x77   : > { %v571_v23 = vld [vmem:[#allocation5 + $0x740] sm:$0xff]  ;;  %761 = vmatpush.msra.mxu1 %v443_v22 }
  0x78   : > { %v375_v24 = vld [vmem:[#allocation5 + $0x120] sm:$0xff]  ;;  %807 = vmatpush.msra.mxu3 %v571_v23 }
  0x79   : > { %v503_v25 = vld [vmem:[#allocation5 + $0x520] sm:$0xff]  ;;  %739 = vmatpush.msra.mxu0 %v375_v24  ;;  %v376_v24 = vld [vmem:[#allocation5 + $0x128] sm:$0xff] }
  0x7a   : > { %v439_v26 = vld [vmem:[#allocation5 + $0x320] sm:$0xff]  ;;  %785 = vmatpush.msra.mxu2 %v503_v25  ;;  %v444_v25 = vld [vmem:[#allocation5 + $0x348] sm:$0xff] }
  0x7b   : > { %v567_v27 = vld [vmem:[#allocation5 + $0x720] sm:$0xff]  ;;  %762 = vmatpush.msra.mxu1 %v439_v26 }
  0x7c   : > { %v371_v28 = vld [vmem:[#allocation5 + $0x100] sm:$0xff]  ;;  %808 = vmatpush.msra.mxu3 %v567_v27 }
  0x7d   : > { %v499_v29 = vld [vmem:[#allocation5 + $0x500] sm:$0xff]  ;;  %740 = vmatpush.msra.mxu0 %v371_v28  ;;  %v372_v28 = vld [vmem:[#allocation5 + $0x108] sm:$0xff] }
  0x7e   : > { %v435_v30 = vld [vmem:[#allocation5 + $0x300] sm:$0xff]  ;;  %786 = vmatpush.msra.mxu2 %v499_v29  ;;  %v440_v29 = vld [vmem:[#allocation5 + $0x328] sm:$0xff] }
  0x7f   : > { %v563_v31 = vld [vmem:[#allocation5 + $0x700] sm:$0xff]  ;;  %763 = vmatpush.msra.mxu1 %v435_v30 }
  0x80   : > { %v367_v32 = vld [vmem:[#allocation5 + $0xe0] sm:$0xff]  ;;  %809 = vmatpush.msra.mxu3 %v563_v31 }
  0x81   : > { %v495_v33 = vld [vmem:[#allocation5 + $0x4e0] sm:$0xff]  ;;  %741 = vmatpush.msra.mxu0 %v367_v32  ;;  %v368_v32 = vld [vmem:[#allocation5 + $0xe8] sm:$0xff] }
  0x82   : > { %v431_v34 = vld [vmem:[#allocation5 + $0x2e0] sm:$0xff]  ;;  %787 = vmatpush.msra.mxu2 %v495_v33  ;;  %v436_v33 = vld [vmem:[#allocation5 + $0x308] sm:$0xff] }
  0x83   : > { %v559_v35 = vld [vmem:[#allocation5 + $0x6e0] sm:$0xff]  ;;  %764 = vmatpush.msra.mxu1 %v431_v34 }
  0x84   : > { %v363_v36 = vld [vmem:[#allocation5 + $0xc0] sm:$0xff]  ;;  %810 = vmatpush.msra.mxu3 %v559_v35 }
  0x85   : > { %v491_v37 = vld [vmem:[#allocation5 + $0x4c0] sm:$0xff]  ;;  %742 = vmatpush.msra.mxu0 %v363_v36  ;;  %v364_v36 = vld [vmem:[#allocation5 + $0xc8] sm:$0xff] }
  0x86   : > { %v427_v38 = vld [vmem:[#allocation5 + $0x2c0] sm:$0xff]  ;;  %788 = vmatpush.msra.mxu2 %v491_v37  ;;  %v432_v37 = vld [vmem:[#allocation5 + $0x2e8] sm:$0xff] }
  0x87   : > { %v555_v39 = vld [vmem:[#allocation5 + $0x6c0] sm:$0xff]  ;;  %765 = vmatpush.msra.mxu1 %v427_v38 }
  0x88   : > { %v359_v40 = vld [vmem:[#allocation5 + $0xa0] sm:$0xff]  ;;  %811 = vmatpush.msra.mxu3 %v555_v39 }
  0x89   : > { %v487_v41 = vld [vmem:[#allocation5 + $0x4a0] sm:$0xff]  ;;  %743 = vmatpush.msra.mxu0 %v359_v40  ;;  %v360_v40 = vld [vmem:[#allocation5 + $0xa8] sm:$0xff] }
  0x8a   : > { %v423_v42 = vld [vmem:[#allocation5 + $0x2a0] sm:$0xff]  ;;  %789 = vmatpush.msra.mxu2 %v487_v41  ;;  %v428_v41 = vld [vmem:[#allocation5 + $0x2c8] sm:$0xff] }
  0x8b   : > { %v551_v43 = vld [vmem:[#allocation5 + $0x6a0] sm:$0xff]  ;;  %766 = vmatpush.msra.mxu1 %v423_v42 }
  0x8c   : > { %v355_v44 = vld [vmem:[#allocation5 + $0x80] sm:$0xff]  ;;  %812 = vmatpush.msra.mxu3 %v551_v43 }
  0x8d   : > { %v483_v45 = vld [vmem:[#allocation5 + $0x480] sm:$0xff]  ;;  %744 = vmatpush.msra.mxu0 %v355_v44  ;;  %v356_v44 = vld [vmem:[#allocation5 + $0x88] sm:$0xff] }
  0x8e   : > { %v419_v46 = vld [vmem:[#allocation5 + $0x280] sm:$0xff]  ;;  %790 = vmatpush.msra.mxu2 %v483_v45  ;;  %v424_v45 = vld [vmem:[#allocation5 + $0x2a8] sm:$0xff] }
  0x8f   : > { %v547_v47 = vld [vmem:[#allocation5 + $0x680] sm:$0xff]  ;;  %767 = vmatpush.msra.mxu1 %v419_v46 }
  0x90   : > { %v351_v48 = vld [vmem:[#allocation5 + $0x60] sm:$0xff]  ;;  %813 = vmatpush.msra.mxu3 %v547_v47 }
  0x91   : > { %v479_v49 = vld [vmem:[#allocation5 + $0x460] sm:$0xff]  ;;  %745 = vmatpush.msra.mxu0 %v351_v48  ;;  %v352_v48 = vld [vmem:[#allocation5 + $0x68] sm:$0xff] }
  0x92   : > { %v415_v50 = vld [vmem:[#allocation5 + $0x260] sm:$0xff]  ;;  %791 = vmatpush.msra.mxu2 %v479_v49  ;;  %v420_v49 = vld [vmem:[#allocation5 + $0x288] sm:$0xff] }
  0x93   : > { %v543_v51 = vld [vmem:[#allocation5 + $0x660] sm:$0xff]  ;;  %768 = vmatpush.msra.mxu1 %v415_v50 }
  0x94   : > { %v347_v52 = vld [vmem:[#allocation5 + $0x40] sm:$0xff]  ;;  %814 = vmatpush.msra.mxu3 %v543_v51 }
  0x95   : > { %v475_v53 = vld [vmem:[#allocation5 + $0x440] sm:$0xff]  ;;  %746 = vmatpush.msra.mxu0 %v347_v52 }
  0x96   : > { %v411_v54 = vld [vmem:[#allocation5 + $0x240] sm:$0xff]  ;;  %792 = vmatpush.msra.mxu2 %v475_v53  ;;  %v348_v53 = vld [vmem:[#allocation5 + $0x48] sm:$0xff] }
  0x97   : > { %v539_v55 = vld [vmem:[#allocation5 + $0x640] sm:$0xff]  ;;  %769 = vmatpush.msra.mxu1 %v411_v54  ;;  %v416_v54 = vld [vmem:[#allocation5 + $0x268] sm:$0xff] }
  0x98   : > { %v343_v56 = vld [vmem:[#allocation5 + $0x20] sm:$0xff]  ;;  %815 = vmatpush.msra.mxu3 %v539_v55  ;;  %v2175_v55 = vld [vmem:[%s2157_s27 + $0x8] sm:$0xff] }
  0x99   : > { %v471_v57 = vld [vmem:[#allocation5 + $0x420] sm:$0xff]  ;;  %747 = vmatpush.msra.mxu0 %v343_v56 }
  0x9a   : > { %v407_v58 = vld [vmem:[#allocation5 + $0x220] sm:$0xff]  ;;  %793 = vmatpush.msra.mxu2 %v471_v57 }
  0x9b   : > { %v535_v59 = vld [vmem:[#allocation5 + $0x620] sm:$0xff]  ;;  %770 = vmatpush.msra.mxu1 %v407_v58  ;;  %v344_v58 = vld [vmem:[#allocation5 + $0x28] sm:$0xff] }
  0x9c   : > { %v339_v60 = vld [vmem:[#allocation5] sm:$0xff]  ;;  %816 = vmatpush.msra.mxu3 %v535_v59  ;;  %v412_v59 = vld [vmem:[#allocation5 + $0x248] sm:$0xff] }
  0x9d   : > { %v467_v61 = vld [vmem:[#allocation5 + $0x400] sm:$0xff]  ;;  %748 = vmatpush.msra.mxu0 %v339_v60  ;;  %v2180_v60 = vld [vmem:[%s2157_s27 + $0x10] sm:$0xff] }
  0x9e   : > { %v655_v62 = vld [vmem:[#allocation5 + $0x9e0] sm:$0xff]  ;;  %794 = vmatpush.msra.mxu2 %v467_v61 }
  0x9f   : > { %v403_v0 = vld [vmem:[#allocation5 + $0x200] sm:$0xff]  ;;  %825 = vmatpush.msrb.mxu0 %v655_v62  ;;  %795 = vmatmul.f32.vlgmr.msra.gmra.mxu2 %v2180_v60 }
  0xa0   : > { %v531_v1 = vld [vmem:[#allocation5 + $0x600] sm:$0xff]  ;;  %871 = vmatpush.msrb.mxu2 %v400_v63  ;;  %771 = vmatpush.msra.mxu1 %v403_v0  ;;  %v340_v63 = vld [vmem:[#allocation5 + $0x8] sm:$0xff] }
  0xa1   : > { %v651_v2 = vld [vmem:[#allocation5 + $0x9c0] sm:$0xff]  ;;  %817 = vmatpush.msra.mxu3 %v531_v1  ;;  %772 = vmatmul.f32.vlgmr.msra.gmra.mxu1 %v2175_v55  ;;  %v408_v0 = vld [vmem:[#allocation5 + $0x228] sm:$0xff] }
  0xa2   : > { %v719_v3 = vld [vmem:[#allocation5 + $0xbe0] sm:$0xff]  ;;  %826 = vmatpush.msrb.mxu0 %v651_v2  ;;  %872 = vmatpush.msrb.mxu2 %v396_v4  ;;  %v528_v1 = vld [vmem:[#allocation5 + $0x5e8] sm:$0xff] }
  0xa3   : > { %v647_v6 = vld [vmem:[#allocation5 + $0x9a0] sm:$0xff]  ;;  %848 = vmatpush.msrb.mxu1 %v719_v3  ;;  %894 = vmatpush.msrb.mxu3 %v464_v5  ;;  %v656_v2 = vld [vmem:[#allocation5 + $0x9e8] sm:$0xff]  ;;  %v2184_v3 = vld [vmem:[%s2157_s27 + $0x18] sm:$0xff] }
  0xa4   : > { %v715_v7 = vld [vmem:[#allocation5 + $0xbc0] sm:$0xff]  ;;  %827 = vmatpush.msrb.mxu0 %v647_v6  ;;  %873 = vmatpush.msrb.mxu2 %v392_v8  ;;  %v404_v5 = vld [vmem:[#allocation5 + $0x208] sm:$0xff]  ;;  %v2187_v6 = vld [vmem:[%s2157_s27 + $0x30] sm:$0xff] }
  0xa5   : > { %v643_v10 = vld [vmem:[#allocation5 + $0x980] sm:$0xff]  ;;  %849 = vmatpush.msrb.mxu1 %v715_v7  ;;  %895 = vmatpush.msrb.mxu3 %v460_v9  ;;  %v592_v7 = vld [vmem:[#allocation5 + $0x7e8] sm:$0xff] }
  0xa6   : > { %v711_v11 = vld [vmem:[#allocation5 + $0xba0] sm:$0xff]  ;;  %828 = vmatpush.msrb.mxu0 %v643_v10  ;;  %874 = vmatpush.msrb.mxu2 %v388_v12  ;;  %v524_v8 = vld [vmem:[#allocation5 + $0x5c8] sm:$0xff] }
  0xa7   : > { %v639_v14 = vld [vmem:[#allocation5 + $0x960] sm:$0xff]  ;;  %850 = vmatpush.msrb.mxu1 %v711_v11  ;;  %896 = vmatpush.msrb.mxu3 %v456_v13  ;;  %v652_v9 = vld [vmem:[#allocation5 + $0x9c8] sm:$0xff]  ;;  %v2191_v11 = vld [vmem:[%s2157_s27 + $0x38] sm:$0xff] }
  0xa8   : > { %v707_v15 = vld [vmem:[#allocation5 + $0xb80] sm:$0xff]  ;;  %829 = vmatpush.msrb.mxu0 %v639_v14  ;;  %875 = vmatpush.msrb.mxu2 %v384_v16  ;;  %v720_v10 = vld [vmem:[#allocation5 + $0xbe8] sm:$0xff] }
  0xa9   : > { %v635_v18 = vld [vmem:[#allocation5 + $0x940] sm:$0xff]  ;;  %851 = vmatpush.msrb.mxu1 %v707_v15  ;;  %897 = vmatpush.msrb.mxu3 %v452_v17  ;;  %v520_v12 = vld [vmem:[#allocation5 + $0x5a8] sm:$0xff] }
  0xaa   : > { %v703_v19 = vld [vmem:[#allocation5 + $0xb60] sm:$0xff]  ;;  %830 = vmatpush.msrb.mxu0 %v635_v18  ;;  %876 = vmatpush.msrb.mxu2 %v380_v20  ;;  %v588_v13 = vld [vmem:[#allocation5 + $0x7c8] sm:$0xff] }
  0xab   : > { %v631_v22 = vld [vmem:[#allocation5 + $0x920] sm:$0xff]  ;;  %852 = vmatpush.msrb.mxu1 %v703_v19  ;;  %898 = vmatpush.msrb.mxu3 %v448_v21  ;;  %v648_v14 = vld [vmem:[#allocation5 + $0x9a8] sm:$0xff] }
  0xac   : > { %v699_v23 = vld [vmem:[#allocation5 + $0xb40] sm:$0xff]  ;;  %831 = vmatpush.msrb.mxu0 %v631_v22  ;;  %877 = vmatpush.msrb.mxu2 %v376_v24  ;;  %v716_v15 = vld [vmem:[#allocation5 + $0xbc8] sm:$0xff] }
  0xad   : > { %v627_v26 = vld [vmem:[#allocation5 + $0x900] sm:$0xff]  ;;  %853 = vmatpush.msrb.mxu1 %v699_v23  ;;  %899 = vmatpush.msrb.mxu3 %v444_v25  ;;  %v516_v16 = vld [vmem:[#allocation5 + $0x588] sm:$0xff] }
  0xae   : > { %v695_v27 = vld [vmem:[#allocation5 + $0xb20] sm:$0xff]  ;;  %832 = vmatpush.msrb.mxu0 %v627_v26  ;;  %878 = vmatpush.msrb.mxu2 %v372_v28  ;;  %v584_v17 = vld [vmem:[#allocation5 + $0x7a8] sm:$0xff] }
  0xaf   : > { %v623_v30 = vld [vmem:[#allocation5 + $0x8e0] sm:$0xff]  ;;  %854 = vmatpush.msrb.mxu1 %v695_v27  ;;  %900 = vmatpush.msrb.mxu3 %v440_v29  ;;  %v644_v18 = vld [vmem:[#allocation5 + $0x988] sm:$0xff] }
  0xb0   : > { %v691_v31 = vld [vmem:[#allocation5 + $0xb00] sm:$0xff]  ;;  %833 = vmatpush.msrb.mxu0 %v623_v30  ;;  %879 = vmatpush.msrb.mxu2 %v368_v32  ;;  %v712_v19 = vld [vmem:[#allocation5 + $0xba8] sm:$0xff] }
  0xb1   : > { %v619_v34 = vld [vmem:[#allocation5 + $0x8c0] sm:$0xff]  ;;  %855 = vmatpush.msrb.mxu1 %v691_v31  ;;  %901 = vmatpush.msrb.mxu3 %v436_v33  ;;  %v512_v21 = vld [vmem:[#allocation5 + $0x568] sm:$0xff] }
  0xb2   : > { %v687_v35 = vld [vmem:[#allocation5 + $0xae0] sm:$0xff]  ;;  %834 = vmatpush.msrb.mxu0 %v619_v34  ;;  %880 = vmatpush.msrb.mxu2 %v364_v36  ;;  %v580_v22 = vld [vmem:[#allocation5 + $0x788] sm:$0xff] }
  0xb3   : > { %v615_v38 = vld [vmem:[#allocation5 + $0x8a0] sm:$0xff]  ;;  %856 = vmatpush.msrb.mxu1 %v687_v35  ;;  %902 = vmatpush.msrb.mxu3 %v432_v37  ;;  %v640_v23 = vld [vmem:[#allocation5 + $0x968] sm:$0xff] }
  0xb4   : > { %v683_v39 = vld [vmem:[#allocation5 + $0xac0] sm:$0xff]  ;;  %835 = vmatpush.msrb.mxu0 %v615_v38  ;;  %881 = vmatpush.msrb.mxu2 %v360_v40  ;;  %v708_v24 = vld [vmem:[#allocation5 + $0xb88] sm:$0xff] }
  0xb5   : > { %v611_v42 = vld [vmem:[#allocation5 + $0x880] sm:$0xff]  ;;  %857 = vmatpush.msrb.mxu1 %v683_v39  ;;  %903 = vmatpush.msrb.mxu3 %v428_v41  ;;  %v2203_v26 = vld [vmem:[%s2157_s27 + $0x48] sm:$0xff] }
  0xb6   : > { %v679_v43 = vld [vmem:[#allocation5 + $0xaa0] sm:$0xff]  ;;  %836 = vmatpush.msrb.mxu0 %v611_v42  ;;  %882 = vmatpush.msrb.mxu2 %v356_v44  ;;  %v508_v27 = vld [vmem:[#allocation5 + $0x548] sm:$0xff] }
  0xb7   : > { %v607_v46 = vld [vmem:[#allocation5 + $0x860] sm:$0xff]  ;;  %858 = vmatpush.msrb.mxu1 %v679_v43  ;;  %904 = vmatpush.msrb.mxu3 %v424_v45  ;;  %v576_v28 = vld [vmem:[#allocation5 + $0x768] sm:$0xff] }
  0xb8   : > { %v675_v47 = vld [vmem:[#allocation5 + $0xa80] sm:$0xff]  ;;  %837 = vmatpush.msrb.mxu0 %v607_v46  ;;  %883 = vmatpush.msrb.mxu2 %v352_v48  ;;  %v636_v29 = vld [vmem:[#allocation5 + $0x948] sm:$0xff] }
  0xb9   : > { %v2172_v50 = vld [vmem:[%s2157_s27] sm:$0xff]  ;;  %859 = vmatpush.msrb.mxu1 %v675_v47  ;;  %905 = vmatpush.msrb.mxu3 %v420_v49  ;;  %v704_v30 = vld [vmem:[#allocation5 + $0xb68] sm:$0xff] }
  0xba   : > { %v671_v51 = vld [vmem:[#allocation5 + $0xa60] sm:$0xff]  ;;  %749 = vmatmul.f32.vlgmr.msra.gmra.mxu0 %v2172_v50  ;;  %884 = vmatpush.msrb.mxu2 %v348_v53  ;;  %v2207_v31 = vld [vmem:[%s2157_s27 + $0x28] sm:$0xff] }
  0xbb   : > { %v603_v52 = vld [vmem:[#allocation5 + $0x840] sm:$0xff]  ;;  %860 = vmatpush.msrb.mxu1 %v671_v51  ;;  %906 = vmatpush.msrb.mxu3 %v416_v54  ;;  %v504_v32 = vld [vmem:[#allocation5 + $0x528] sm:$0xff] }
  0xbc   : > { %v599_v56 = vld [vmem:[#allocation5 + $0x820] sm:$0xff]  ;;  %838 = vmatpush.msrb.mxu0 %v603_v52  ;;  %885 = vmatpush.msrb.mxu2 %v344_v58  ;;  %v572_v33 = vld [vmem:[#allocation5 + $0x748] sm:$0xff] }
  0xbd   : > { %v667_v57 = vld [vmem:[#allocation5 + $0xa40] sm:$0xff]  ;;  %907 = vmatpush.msrb.mxu3 %v412_v59  ;;  %775 = vmatmul.f32.gmra.mxu1 %v2191_v11  ;;  %v632_v34 = vld [vmem:[#allocation5 + $0x928] sm:$0xff] }
  0xbe   : > { %v595_v61 = vld [vmem:[#allocation5 + $0x800] sm:$0xff]  ;;  %839 = vmatpush.msrb.mxu0 %v599_v56  ;;  %861 = vmatpush.msrb.mxu1 %v667_v57  ;;  %v700_v35 = vld [vmem:[#allocation5 + $0xb48] sm:$0xff] }
  0xbf   : > { %v663_v62 = vld [vmem:[#allocation5 + $0xa20] sm:$0xff]  ;;  %886 = vmatpush.msrb.mxu2 %v340_v63  ;;  %908 = vmatpush.msrb.mxu3 %v408_v0  ;;  %v500_v36 = vld [vmem:[#allocation5 + $0x508] sm:$0xff]  ;;  %v2214_v63 = vld [vmem:[%s2157_s27 + $0x50] sm:$0xff] }
  0xc0   : > { %840 = vmatpush.msrb.mxu0 %v595_v61  ;;  %862 = vmatpush.msrb.mxu1 %v663_v62  ;;  %v659_v4 = vld [vmem:[#allocation5 + $0xa00] sm:$0xff]  ;;  %v568_v37 = vld [vmem:[#allocation5 + $0x728] sm:$0xff] }
  0xc1   : > { %963 = vmatpush.msra.mxu2 %v656_v2  ;;  %818 = vmatmul.f32.vlgmr.msra.gmra.mxu3 %v2184_v3  ;;  %v2196_v20 = vld [vmem:[%s2157_s27 + $0x40] sm:$0xff]  ;;  %v628_v38 = vld [vmem:[#allocation5 + $0x908] sm:$0xff] }
  0xc2   : > { %917 = vmatpush.msra.mxu0 %v528_v1  ;;  %863 = vmatpush.msrb.mxu1 %v659_v4  ;;  %v2199_v25 = vld [vmem:[%s2157_s27 + $0x20] sm:$0xff]  ;;  %v696_v39 = vld [vmem:[#allocation5 + $0xb28] sm:$0xff] }
  0xc3   : > { %909 = vmatpush.msrb.mxu3 %v404_v5  ;;  %752 = vmatmul.f32.gmra.mxu0 %v2187_v6  ;;  %v496_v40 = vld [vmem:[#allocation5 + $0x4e8] sm:$0xff]  ;;  %v2219_v5 = vld [vmem:[%s2157_s27 + $0x58] sm:$0xff] }
  0xc4   : > { %940 = vmatpush.msra.mxu1 %v592_v7  ;;  %918 = vmatpush.msra.mxu0 %v524_v8  ;;  %v564_v41 = vld [vmem:[#allocation5 + $0x708] sm:$0xff] }
  0xc5   : > { %964 = vmatpush.msra.mxu2 %v652_v9  ;;  %986 = vmatpush.msra.mxu3 %v720_v10  ;;  %v624_v42 = vld [vmem:[#allocation5 + $0x8e8] sm:$0xff] }
  0xc6   : > { %919 = vmatpush.msra.mxu0 %v520_v12  ;;  %941 = vmatpush.msra.mxu1 %v588_v13  ;;  %v692_v43 = vld [vmem:[#allocation5 + $0xb08] sm:$0xff] }
  0xc7   : > { %965 = vmatpush.msra.mxu2 %v648_v14  ;;  %987 = vmatpush.msra.mxu3 %v716_v15  ;;  %v492_v44 = vld [vmem:[#allocation5 + $0x4c8] sm:$0xff] }
  0xc8   : > { %920 = vmatpush.msra.mxu0 %v516_v16  ;;  %942 = vmatpush.msra.mxu1 %v584_v17  ;;  %v560_v45 = vld [vmem:[#allocation5 + $0x6e8] sm:$0xff]  ;;  %v401_v16 = vld [vmem:[#allocation5 + $0x1f0] sm:$0xff] }
  0xc9   : > { %966 = vmatpush.msra.mxu2 %v644_v18  ;;  %988 = vmatpush.msra.mxu3 %v712_v19  ;;  %v620_v46 = vld [vmem:[#allocation5 + $0x8c8] sm:$0xff]  ;;  %v529_v17 = vld [vmem:[#allocation5 + $0x5f0] sm:$0xff] }
  0xca   : > { %798 = vmatmul.f32.gmra.mxu2 %v2196_v20  ;;  %921 = vmatpush.msra.mxu0 %v512_v21  ;;  %v688_v47 = vld [vmem:[#allocation5 + $0xae8] sm:$0xff]  ;;  %v397_v21 = vld [vmem:[#allocation5 + $0x1d0] sm:$0xff] }
  0xcb   : > { %943 = vmatpush.msra.mxu1 %v580_v22  ;;  %967 = vmatpush.msra.mxu2 %v640_v23  ;;  %v488_v48 = vld [vmem:[#allocation5 + $0x4a8] sm:$0xff]  ;;  %v465_v22 = vld [vmem:[#allocation5 + $0x3f0] sm:$0xff] }
  0xcc   : > { %989 = vmatpush.msra.mxu3 %v708_v24  ;;  %841 = vmatmul.f32.vlgmr.msrb.gmra.mxu0 %v2199_v25  ;;  %v556_v49 = vld [vmem:[#allocation5 + $0x6c8] sm:$0xff]  ;;  %v525_v23 = vld [vmem:[#allocation5 + $0x5d0] sm:$0xff] }
  0xcd   : > { %821 = vmatmul.f32.gmra.mxu3 %v2203_v26  ;;  %922 = vmatpush.msra.mxu0 %v508_v27  ;;  %v616_v51 = vld [vmem:[#allocation5 + $0x8a8] sm:$0xff]  ;;  %v593_v24 = vld [vmem:[#allocation5 + $0x7f0] sm:$0xff] }
  0xce   : > { %944 = vmatpush.msra.mxu1 %v576_v28  ;;  %968 = vmatpush.msra.mxu2 %v636_v29  ;;  %v684_v52 = vld [vmem:[#allocation5 + $0xac8] sm:$0xff]  ;;  %v393_v27 = vld [vmem:[#allocation5 + $0x1b0] sm:$0xff] }
  0xcf   : > { %990 = vmatpush.msra.mxu3 %v704_v30  ;;  %864 = vmatmul.f32.vlgmr.msrb.gmra.mxu1 %v2207_v31  ;;  %v484_v53 = vld [vmem:[#allocation5 + $0x488] sm:$0xff]  ;;  %v461_v28 = vld [vmem:[#allocation5 + $0x3d0] sm:$0xff] }
  0xd0   : > { %923 = vmatpush.msra.mxu0 %v504_v32  ;;  %945 = vmatpush.msra.mxu1 %v572_v33  ;;  %v552_v54 = vld [vmem:[#allocation5 + $0x6a8] sm:$0xff]  ;;  %v521_v29 = vld [vmem:[#allocation5 + $0x5b0] sm:$0xff] }
  0xd1   : > { %969 = vmatpush.msra.mxu2 %v632_v34  ;;  %991 = vmatpush.msra.mxu3 %v700_v35  ;;  %v612_v56 = vld [vmem:[#allocation5 + $0x888] sm:$0xff]  ;;  %v589_v30 = vld [vmem:[#allocation5 + $0x7d0] sm:$0xff] }
  0xd2   : > { %924 = vmatpush.msra.mxu0 %v500_v36  ;;  %946 = vmatpush.msra.mxu1 %v568_v37  ;;  %v680_v57 = vld [vmem:[#allocation5 + $0xaa8] sm:$0xff]  ;;  %v389_v32 = vld [vmem:[#allocation5 + $0x190] sm:$0xff] }
  0xd3   : > { %970 = vmatpush.msra.mxu2 %v628_v38  ;;  %992 = vmatpush.msra.mxu3 %v696_v39  ;;  %v480_v58 = vld [vmem:[#allocation5 + $0x468] sm:$0xff]  ;;  %v457_v33 = vld [vmem:[#allocation5 + $0x3b0] sm:$0xff] }
  0xd4   : > { %887 = vmatmul.f32.vlgmr.msrb.gmra.mxu2 %v2172_v50  ;;  %925 = vmatpush.msra.mxu0 %v496_v40  ;;  %v548_v59 = vld [vmem:[#allocation5 + $0x688] sm:$0xff]  ;;  %v517_v34 = vld [vmem:[#allocation5 + $0x590] sm:$0xff] }
  0xd5   : > { %947 = vmatpush.msra.mxu1 %v564_v41  ;;  %971 = vmatpush.msra.mxu2 %v624_v42  ;;  %v608_v61 = vld [vmem:[#allocation5 + $0x868] sm:$0xff]  ;;  %v585_v35 = vld [vmem:[#allocation5 + $0x7b0] sm:$0xff] }
  0xd6   : > { %993 = vmatpush.msra.mxu3 %v692_v43  ;;  %926 = vmatpush.msra.mxu0 %v492_v44  ;;  %v676_v62 = vld [vmem:[#allocation5 + $0xa88] sm:$0xff]  ;;  %v385_v36 = vld [vmem:[#allocation5 + $0x170] sm:$0xff] }
  0xd7   : > { %910 = vmatmul.f32.vlgmr.msrb.gmra.mxu3 %v2175_v55  ;;  %948 = vmatpush.msra.mxu1 %v560_v45  ;;  %v476_v0 = vld [vmem:[#allocation5 + $0x448] sm:$0xff]  ;;  %v453_v37 = vld [vmem:[#allocation5 + $0x390] sm:$0xff] }
  0xd8   : > { %972 = vmatpush.msra.mxu2 %v620_v46  ;;  %994 = vmatpush.msra.mxu3 %v688_v47  ;;  %v544_v1 = vld [vmem:[#allocation5 + $0x668] sm:$0xff]  ;;  %v513_v38 = vld [vmem:[#allocation5 + $0x570] sm:$0xff] }
  0xd9   : > { %927 = vmatpush.msra.mxu0 %v488_v48  ;;  %949 = vmatpush.msra.mxu1 %v556_v49  ;;  %v604_v2 = vld [vmem:[#allocation5 + $0x848] sm:$0xff]  ;;  %v581_v39 = vld [vmem:[#allocation5 + $0x790] sm:$0xff] }
  0xda   : > { %973 = vmatpush.msra.mxu2 %v616_v51  ;;  %995 = vmatpush.msra.mxu3 %v684_v52  ;;  %v672_v4 = vld [vmem:[#allocation5 + $0xa68] sm:$0xff]  ;;  %v381_v40 = vld [vmem:[#allocation5 + $0x150] sm:$0xff] }
  0xdb   : > { %928 = vmatpush.msra.mxu0 %v484_v53  ;;  %950 = vmatpush.msra.mxu1 %v552_v54  ;;  %v472_v7 = vld [vmem:[#allocation5 + $0x428] sm:$0xff]  ;;  %v449_v41 = vld [vmem:[#allocation5 + $0x370] sm:$0xff] }
  0xdc   : > { %974 = vmatpush.msra.mxu2 %v612_v56  ;;  %996 = vmatpush.msra.mxu3 %v680_v57  ;;  %v540_v8 = vld [vmem:[#allocation5 + $0x648] sm:$0xff]  ;;  %v509_v42 = vld [vmem:[#allocation5 + $0x550] sm:$0xff] }
  0xdd   : > { %890 = vmatmul.f32.gmra.mxu2 %v2187_v6  ;;  %929 = vmatpush.msra.mxu0 %v480_v58  ;;  %v600_v9 = vld [vmem:[#allocation5 + $0x828] sm:$0xff]  ;;  %v577_v43 = vld [vmem:[#allocation5 + $0x770] sm:$0xff] }
  0xde   : > { %951 = vmatpush.msra.mxu1 %v548_v59  ;;  %975 = vmatpush.msra.mxu2 %v608_v61  ;;  %v668_v10 = vld [vmem:[#allocation5 + $0xa48] sm:$0xff]  ;;  %v377_v44 = vld [vmem:[#allocation5 + $0x130] sm:$0xff] }
  0xdf   : > { %997 = vmatpush.msra.mxu3 %v676_v62  ;;  %844 = vmatmul.f32.gmra.mxu0 %v2214_v63  ;;  %v468_v12 = vld [vmem:[#allocation5 + $0x408] sm:$0xff]  ;;  %v445_v45 = vld [vmem:[#allocation5 + $0x350] sm:$0xff] }
  0xe0   : > { %913 = vmatmul.f32.gmra.mxu3 %v2191_v11  ;;  %930 = vmatpush.msra.mxu0 %v476_v0  ;;  %v536_v13 = vld [vmem:[#allocation5 + $0x628] sm:$0xff]  ;;  %v505_v46 = vld [vmem:[#allocation5 + $0x530] sm:$0xff] }
  0xe1   : > { %952 = vmatpush.msra.mxu1 %v544_v1  ;;  %976 = vmatpush.msra.mxu2 %v604_v2  ;;  %v596_v14 = vld [vmem:[#allocation5 + $0x808] sm:$0xff]  ;;  %v573_v47 = vld [vmem:[#allocation5 + $0x750] sm:$0xff] }
  0xe2   : > { %998 = vmatpush.msra.mxu3 %v672_v4  ;;  %867 = vmatmul.f32.gmra.mxu1 %v2219_v5  ;;  %v664_v15 = vld [vmem:[#allocation5 + $0xa28] sm:$0xff]  ;;  %v373_v48 = vld [vmem:[#allocation5 + $0x110] sm:$0xff] }
  0xe3   : > { %931 = vmatpush.msra.mxu0 %v472_v7  ;;  %953 = vmatpush.msra.mxu1 %v540_v8  ;;  %v532_v18 = vld [vmem:[#allocation5 + $0x608] sm:$0xff]  ;;  %v441_v49 = vld [vmem:[#allocation5 + $0x330] sm:$0xff] }
  0xe4   : > { %977 = vmatpush.msra.mxu2 %v600_v9  ;;  %999 = vmatpush.msra.mxu3 %v668_v10  ;;  %v660_v19 = vld [vmem:[#allocation5 + $0xa08] sm:$0xff]  ;;  %v501_v51 = vld [vmem:[#allocation5 + $0x510] sm:$0xff] }
  0xe5   : > { %932 = vmatpush.msra.mxu0 %v468_v12  ;;  %954 = vmatpush.msra.mxu1 %v536_v13  ;;  %v569_v52 = vld [vmem:[#allocation5 + $0x730] sm:$0xff] }
  0xe6   : > { %978 = vmatpush.msra.mxu2 %v596_v14  ;;  %1000 = vmatpush.msra.mxu3 %v664_v15  ;;  %v369_v53 = vld [vmem:[#allocation5 + $0xf0] sm:$0xff] }
  0xe7   : > { %979 = vmatmul.f32.vlgmr.msra.gmra.mxu2 %v2199_v25  ;;  %1009 = vmatpush.msrb.mxu0 %v401_v16  ;;  %v437_v54 = vld [vmem:[#allocation5 + $0x310] sm:$0xff] }
  0xe8   : > { %1055 = vmatpush.msrb.mxu2 %v529_v17  ;;  %955 = vmatpush.msra.mxu1 %v532_v18  ;;  %v497_v56 = vld [vmem:[#allocation5 + $0x4f0] sm:$0xff] }
  0xe9   : > { %1001 = vmatpush.msra.mxu3 %v660_v19  ;;  %933 = vmatmul.f32.vlgmr.msra.gmra.mxu0 %v2180_v60  ;;  %v565_v57 = vld [vmem:[#allocation5 + $0x710] sm:$0xff] }
  0xea   : > { %1002 = vmatmul.f32.vlgmr.msra.gmra.mxu3 %v2207_v31  ;;  %1010 = vmatpush.msrb.mxu0 %v397_v21  ;;  %v365_v58 = vld [vmem:[#allocation5 + $0xd0] sm:$0xff] }
  0xeb   : > { %1032 = vmatpush.msrb.mxu1 %v465_v22  ;;  %1056 = vmatpush.msrb.mxu2 %v525_v23  ;;  %v433_v59 = vld [vmem:[#allocation5 + $0x2f0] sm:$0xff] }
  0xec   : > { %1078 = vmatpush.msrb.mxu3 %v593_v24  ;;  %956 = vmatmul.f32.vlgmr.msra.gmra.mxu1 %v2184_v3  ;;  %v493_v61 = vld [vmem:[#allocation5 + $0x4d0] sm:$0xff] }
  0xed   : > { %1011 = vmatpush.msrb.mxu0 %v393_v27  ;;  %1033 = vmatpush.msrb.mxu1 %v461_v28  ;;  %v561_v62 = vld [vmem:[#allocation5 + $0x6f0] sm:$0xff] }
  0xee   : > { %1057 = vmatpush.msrb.mxu2 %v521_v29  ;;  %1079 = vmatpush.msrb.mxu3 %v589_v30  ;;  %v361_v0 = vld [vmem:[#allocation5 + $0xb0] sm:$0xff] }
  0xef   : > { %1012 = vmatpush.msrb.mxu0 %v389_v32  ;;  %1034 = vmatpush.msrb.mxu1 %v457_v33  ;;  %v429_v1 = vld [vmem:[#allocation5 + $0x2d0] sm:$0xff]  ;;  %v402_v33 = vld [vmem:[#allocation5 + $0x1f8] sm:$0xff] }
  0xf0   : > { %1058 = vmatpush.msrb.mxu2 %v517_v34  ;;  %1080 = vmatpush.msrb.mxu3 %v585_v35  ;;  %v489_v2 = vld [vmem:[#allocation5 + $0x4b0] sm:$0xff] }
  0xf1   : > { %982 = vmatmul.f32.gmra.mxu2 %v2214_v63  ;;  %1013 = vmatpush.msrb.mxu0 %v385_v36  ;;  %v557_v4 = vld [vmem:[#allocation5 + $0x6d0] sm:$0xff] }
  0xf2   : > { %1035 = vmatpush.msrb.mxu1 %v453_v37  ;;  %1059 = vmatpush.msrb.mxu2 %v513_v38  ;;  %v357_v7 = vld [vmem:[#allocation5 + $0x90] sm:$0xff]  ;;  %v398_v38 = vld [vmem:[#allocation5 + $0x1d8] sm:$0xff] }
  0xf3   : > { %1081 = vmatpush.msrb.mxu3 %v581_v39  ;;  %936 = vmatmul.f32.gmra.mxu0 %v2196_v20  ;;  %v425_v8 = vld [vmem:[#allocation5 + $0x2b0] sm:$0xff]  ;;  %v466_v39 = vld [vmem:[#allocation5 + $0x3f8] sm:$0xff] }
  0xf4   : > { %1005 = vmatmul.f32.gmra.mxu3 %v2219_v5  ;;  %1014 = vmatpush.msrb.mxu0 %v381_v40  ;;  %v485_v9 = vld [vmem:[#allocation5 + $0x490] sm:$0xff] }
  0xf5   : > { %1036 = vmatpush.msrb.mxu1 %v449_v41  ;;  %1060 = vmatpush.msrb.mxu2 %v509_v42  ;;  %v553_v10 = vld [vmem:[#allocation5 + $0x6b0] sm:$0xff]  ;;  %v394_v42 = vld [vmem:[#allocation5 + $0x1b8] sm:$0xff] }
  0xf6   : > { %1082 = vmatpush.msrb.mxu3 %v577_v43  ;;  %959 = vmatmul.f32.gmra.mxu1 %v2203_v26  ;;  %v353_v12 = vld [vmem:[#allocation5 + $0x70] sm:$0xff]  ;;  %v462_v43 = vld [vmem:[#allocation5 + $0x3d8] sm:$0xff] }
  0xf7   : > { %1015 = vmatpush.msrb.mxu0 %v377_v44  ;;  %1037 = vmatpush.msrb.mxu1 %v445_v45  ;;  %v421_v13 = vld [vmem:[#allocation5 + $0x290] sm:$0xff] }
  0xf8   : > { %1061 = vmatpush.msrb.mxu2 %v505_v46  ;;  %1083 = vmatpush.msrb.mxu3 %v573_v47  ;;  %v481_v14 = vld [vmem:[#allocation5 + $0x470] sm:$0xff]  ;;  %v390_v46 = vld [vmem:[#allocation5 + $0x198] sm:$0xff] }
  0xf9   : > { %1016 = vmatpush.msrb.mxu0 %v373_v48  ;;  %1038 = vmatpush.msrb.mxu1 %v441_v49  ;;  %v549_v15 = vld [vmem:[#allocation5 + $0x690] sm:$0xff]  ;;  %v458_v47 = vld [vmem:[#allocation5 + $0x3b8] sm:$0xff] }
  0xfa   : > { %1062 = vmatpush.msrb.mxu2 %v501_v51  ;;  %1084 = vmatpush.msrb.mxu3 %v569_v52  ;;  %v349_v16 = vld [vmem:[#allocation5 + $0x50] sm:$0xff]  ;;  %v386_v51 = vld [vmem:[#allocation5 + $0x178] sm:$0xff] }
  0xfb   : > { %1017 = vmatpush.msrb.mxu0 %v369_v53  ;;  %1039 = vmatpush.msrb.mxu1 %v437_v54  ;;  %v417_v17 = vld [vmem:[#allocation5 + $0x270] sm:$0xff]  ;;  %v454_v52 = vld [vmem:[#allocation5 + $0x398] sm:$0xff] }
  0xfc   : > { %1063 = vmatpush.msrb.mxu2 %v497_v56  ;;  %1085 = vmatpush.msrb.mxu3 %v565_v57  ;;  %v477_v18 = vld [vmem:[#allocation5 + $0x450] sm:$0xff]  ;;  %v382_v56 = vld [vmem:[#allocation5 + $0x158] sm:$0xff] }
  0xfd   : > { %1018 = vmatpush.msrb.mxu0 %v365_v58  ;;  %1040 = vmatpush.msrb.mxu1 %v433_v59  ;;  %v545_v19 = vld [vmem:[#allocation5 + $0x670] sm:$0xff]  ;;  %v450_v57 = vld [vmem:[#allocation5 + $0x378] sm:$0xff] }
  0xfe   : > { %1064 = vmatpush.msrb.mxu2 %v493_v61  ;;  %1086 = vmatpush.msrb.mxu3 %v561_v62  ;;  %v345_v21 = vld [vmem:[#allocation5 + $0x30] sm:$0xff]  ;;  %v378_v61 = vld [vmem:[#allocation5 + $0x138] sm:$0xff] }
  0xff   : > { %1019 = vmatpush.msrb.mxu0 %v361_v0  ;;  %1041 = vmatpush.msrb.mxu1 %v429_v1  ;;  %v413_v22 = vld [vmem:[#allocation5 + $0x250] sm:$0xff]  ;;  %v446_v62 = vld [vmem:[#allocation5 + $0x358] sm:$0xff] }
 0x100   : > { %1065 = vmatpush.msrb.mxu2 %v489_v2  ;;  %1087 = vmatpush.msrb.mxu3 %v557_v4  ;;  %v473_v23 = vld [vmem:[#allocation5 + $0x430] sm:$0xff]  ;;  %v374_v2 = vld [vmem:[#allocation5 + $0x118] sm:$0xff] }
 0x101   : > { %1020 = vmatpush.msrb.mxu0 %v357_v7  ;;  %1042 = vmatpush.msrb.mxu1 %v425_v8  ;;  %v541_v24 = vld [vmem:[#allocation5 + $0x650] sm:$0xff]  ;;  %v442_v4 = vld [vmem:[#allocation5 + $0x338] sm:$0xff] }
 0x102   : > { %1066 = vmatpush.msrb.mxu2 %v485_v9  ;;  %1088 = vmatpush.msrb.mxu3 %v553_v10  ;;  %v341_v27 = vld [vmem:[#allocation5 + $0x10] sm:$0xff]  ;;  %v370_v9 = vld [vmem:[#allocation5 + $0xf8] sm:$0xff] }
 0x103   : > { %1021 = vmatpush.msrb.mxu0 %v353_v12  ;;  %1043 = vmatpush.msrb.mxu1 %v421_v13  ;;  %v409_v28 = vld [vmem:[#allocation5 + $0x230] sm:$0xff]  ;;  %v438_v10 = vld [vmem:[#allocation5 + $0x318] sm:$0xff] }
 0x104   : > { %1067 = vmatpush.msrb.mxu2 %v481_v14  ;;  %1089 = vmatpush.msrb.mxu3 %v549_v15  ;;  %v469_v29 = vld [vmem:[#allocation5 + $0x410] sm:$0xff]  ;;  %v366_v14 = vld [vmem:[#allocation5 + $0xd8] sm:$0xff] }
 0x105   : > { %1022 = vmatpush.msrb.mxu0 %v349_v16  ;;  %1044 = vmatpush.msrb.mxu1 %v417_v17  ;;  %v537_v30 = vld [vmem:[#allocation5 + $0x630] sm:$0xff]  ;;  %v434_v15 = vld [vmem:[#allocation5 + $0x2f8] sm:$0xff] }
 0x106   : > { %1068 = vmatpush.msrb.mxu2 %v477_v18  ;;  %1090 = vmatpush.msrb.mxu3 %v545_v19  ;;  %v657_v32 = vld [vmem:[#allocation5 + $0x9f0] sm:$0xff]  ;;  %v362_v18 = vld [vmem:[#allocation5 + $0xb8] sm:$0xff] }
 0x107   : > { %1023 = vmatpush.msrb.mxu0 %v345_v21  ;;  %1045 = vmatpush.msrb.mxu1 %v413_v22  ;;  %v405_v34 = vld [vmem:[#allocation5 + $0x210] sm:$0xff]  ;;  %v430_v19 = vld [vmem:[#allocation5 + $0x2d8] sm:$0xff] }
 0x108   : > { %1069 = vmatpush.msrb.mxu2 %v473_v23  ;;  %1091 = vmatpush.msrb.mxu3 %v541_v24  ;;  %v533_v35 = vld [vmem:[#allocation5 + $0x610] sm:$0xff]  ;;  %v358_v22 = vld [vmem:[#allocation5 + $0x98] sm:$0xff] }
 0x109   : > { %1024 = vmatpush.msrb.mxu0 %v341_v27  ;;  %1046 = vmatpush.msrb.mxu1 %v409_v28  ;;  %v653_v36 = vld [vmem:[#allocation5 + $0x9d0] sm:$0xff]  ;;  %v426_v23 = vld [vmem:[#allocation5 + $0x2b8] sm:$0xff] }
 0x10a   : > { %1070 = vmatpush.msrb.mxu2 %v469_v29  ;;  %1092 = vmatpush.msrb.mxu3 %v537_v30  ;;  %v721_v37 = vld [vmem:[#allocation5 + $0xbf0] sm:$0xff]  ;;  %v354_v27 = vld [vmem:[#allocation5 + $0x78] sm:$0xff] }
 0x10b   : > { %1101 = vmatpush.msra.mxu0 %v657_v32  ;;  %1047 = vmatpush.msrb.mxu1 %v405_v34  ;;  %v649_v40 = vld [vmem:[#allocation5 + $0x9b0] sm:$0xff]  ;;  %v422_v28 = vld [vmem:[#allocation5 + $0x298] sm:$0xff] }
 0x10c   : > { %1147 = vmatpush.msra.mxu2 %v402_v33  ;;  %1093 = vmatpush.msrb.mxu3 %v533_v35  ;;  %v717_v41 = vld [vmem:[#allocation5 + $0xbd0] sm:$0xff]  ;;  %v350_v32 = vld [vmem:[#allocation5 + $0x58] sm:$0xff] }
 0x10d   : > { %1102 = vmatpush.msra.mxu0 %v653_v36  ;;  %1124 = vmatpush.msra.mxu1 %v721_v37  ;;  %v645_v44 = vld [vmem:[#allocation5 + $0x990] sm:$0xff]  ;;  %v418_v33 = vld [vmem:[#allocation5 + $0x278] sm:$0xff] }
 0x10e   : > { %1148 = vmatpush.msra.mxu2 %v398_v38  ;;  %1170 = vmatpush.msra.mxu3 %v466_v39  ;;  %v713_v45 = vld [vmem:[#allocation5 + $0xbb0] sm:$0xff]  ;;  %v346_v35 = vld [vmem:[#allocation5 + $0x38] sm:$0xff] }
 0x10f   : > { %1103 = vmatpush.msra.mxu0 %v649_v40  ;;  %1125 = vmatpush.msra.mxu1 %v717_v41  ;;  %v641_v48 = vld [vmem:[#allocation5 + $0x970] sm:$0xff]  ;;  %v414_v36 = vld [vmem:[#allocation5 + $0x258] sm:$0xff] }
 0x110   : > { %1149 = vmatpush.msra.mxu2 %v394_v42  ;;  %1171 = vmatpush.msra.mxu3 %v462_v43  ;;  %v709_v49 = vld [vmem:[#allocation5 + $0xb90] sm:$0xff]  ;;  %v342_v37 = vld [vmem:[#allocation5 + $0x18] sm:$0xff] }
 0x111   : > { %1104 = vmatpush.msra.mxu0 %v645_v44  ;;  %1126 = vmatpush.msra.mxu1 %v713_v45  ;;  %v637_v53 = vld [vmem:[#allocation5 + $0x950] sm:$0xff]  ;;  %v410_v38 = vld [vmem:[#allocation5 + $0x238] sm:$0xff] }
 0x112   : > { %1150 = vmatpush.msra.mxu2 %v390_v46  ;;  %1172 = vmatpush.msra.mxu3 %v458_v47  ;;  %v705_v54 = vld [vmem:[#allocation5 + $0xb70] sm:$0xff]  ;;  %v658_v39 = vld [vmem:[#allocation5 + $0x9f8] sm:$0xff] }
 0x113   : > { %1105 = vmatpush.msra.mxu0 %v641_v48  ;;  %1127 = vmatpush.msra.mxu1 %v709_v49  ;;  %v633_v58 = vld [vmem:[#allocation5 + $0x930] sm:$0xff]  ;;  %v406_v41 = vld [vmem:[#allocation5 + $0x218] sm:$0xff] }
 0x114   : > { %1151 = vmatpush.msra.mxu2 %v386_v51  ;;  %1173 = vmatpush.msra.mxu3 %v454_v52  ;;  %v701_v59 = vld [vmem:[#allocation5 + $0xb50] sm:$0xff]  ;;  %v526_v42 = vld [vmem:[#allocation5 + $0x5d8] sm:$0xff] }
 0x115   : > { %1106 = vmatpush.msra.mxu0 %v637_v53  ;;  %1128 = vmatpush.msra.mxu1 %v705_v54  ;;  %v629_v0 = vld [vmem:[#allocation5 + $0x910] sm:$0xff]  ;;  %v594_v43 = vld [vmem:[#allocation5 + $0x7f8] sm:$0xff] }
 0x116   : > { %1152 = vmatpush.msra.mxu2 %v382_v56  ;;  %1174 = vmatpush.msra.mxu3 %v450_v57  ;;  %v697_v1 = vld [vmem:[#allocation5 + $0xb30] sm:$0xff]  ;;  %v654_v44 = vld [vmem:[#allocation5 + $0x9d8] sm:$0xff] }
 0x117   : > { %1107 = vmatpush.msra.mxu0 %v633_v58  ;;  %1129 = vmatpush.msra.mxu1 %v701_v59  ;;  %v693_v7 = vld [vmem:[#allocation5 + $0xb10] sm:$0xff]  ;;  %v722_v45 = vld [vmem:[#allocation5 + $0xbf8] sm:$0xff] }
 0x118   : > { %1153 = vmatpush.msra.mxu2 %v378_v61  ;;  %1175 = vmatpush.msra.mxu3 %v446_v62  ;;  %v625_v8 = vld [vmem:[#allocation5 + $0x8f0] sm:$0xff]  ;;  %v590_v46 = vld [vmem:[#allocation5 + $0x7d8] sm:$0xff] }
 0x119   : > { %1108 = vmatpush.msra.mxu0 %v629_v0  ;;  %1130 = vmatpush.msra.mxu1 %v697_v1  ;;  %v621_v12 = vld [vmem:[#allocation5 + $0x8d0] sm:$0xff]  ;;  %v650_v47 = vld [vmem:[#allocation5 + $0x9b8] sm:$0xff] }
 0x11a   : > { %1154 = vmatpush.msra.mxu2 %v374_v2  ;;  %1176 = vmatpush.msra.mxu3 %v442_v4  ;;  %v689_v13 = vld [vmem:[#allocation5 + $0xaf0] sm:$0xff]  ;;  %v718_v48 = vld [vmem:[#allocation5 + $0xbd8] sm:$0xff] }
 0x11b   : > { %1025 = vmatmul.f32.vlgmr.msrb.gmra.mxu0 %v2172_v50  ;;  %1131 = vmatpush.msra.mxu1 %v693_v7  ;;  %v617_v16 = vld [vmem:[#allocation5 + $0x8b0] sm:$0xff]  ;;  %v646_v49 = vld [vmem:[#allocation5 + $0x998] sm:$0xff] }
 0x11c   : > { %1109 = vmatpush.msra.mxu0 %v625_v8  ;;  %1155 = vmatpush.msra.mxu2 %v370_v9  ;;  %v685_v17 = vld [vmem:[#allocation5 + $0xad0] sm:$0xff]  ;;  %v714_v51 = vld [vmem:[#allocation5 + $0xbb8] sm:$0xff] }
 0x11d   : > { %1177 = vmatpush.msra.mxu3 %v438_v10  ;;  %1048 = vmatmul.f32.vlgmr.msrb.gmra.mxu1 %v2175_v55  ;;  %v613_v21 = vld [vmem:[#allocation5 + $0x890] sm:$0xff]  ;;  %v582_v52 = vld [vmem:[#allocation5 + $0x798] sm:$0xff] }
 0x11e   : > { %1110 = vmatpush.msra.mxu0 %v621_v12  ;;  %1132 = vmatpush.msra.mxu1 %v689_v13  ;;  %v681_v50 = vld [vmem:[#allocation5 + $0xab0] sm:$0xff]  ;;  %v642_v53 = vld [vmem:[#allocation5 + $0x978] sm:$0xff] }
 0x11f   : > { %1156 = vmatpush.msra.mxu2 %v366_v14  ;;  %1178 = vmatpush.msra.mxu3 %v434_v15  ;;  %v609_v55 = vld [vmem:[#allocation5 + $0x870] sm:$0xff]  ;;  %v710_v54 = vld [vmem:[#allocation5 + $0xb98] sm:$0xff] }
 0x120   : > { %1111 = vmatpush.msra.mxu0 %v617_v16  ;;  %1133 = vmatpush.msra.mxu1 %v685_v17  ;;  %v677_v24 = vld [vmem:[#allocation5 + $0xa90] sm:$0xff]  ;;  %v510_v56 = vld [vmem:[#allocation5 + $0x558] sm:$0xff]  ;;  %v1711_v16 = vld [vmem:[%s2157_s27] sm:$0xff] }
 0x121   : > { %1157 = vmatpush.msra.mxu2 %v362_v18  ;;  %1179 = vmatpush.msra.mxu3 %v430_v19  ;;  %v605_v29 = vld [vmem:[#allocation5 + $0x850] sm:$0xff]  ;;  %v578_v57 = vld [vmem:[#allocation5 + $0x778] sm:$0xff] }
 0x122   : > { %1071 = vmatmul.f32.vlgmr.msrb.gmra.mxu2 %v2180_v60  ;;  %1112 = vmatpush.msra.mxu0 %v613_v21  ;;  %v673_v30 = vld [vmem:[#allocation5 + $0xa70] sm:$0xff]  ;;  %v638_v58 = vld [vmem:[#allocation5 + $0x958] sm:$0xff] }
 0x123   : > { %1134 = vmatpush.msra.mxu1 %v681_v50  ;;  %1158 = vmatpush.msra.mxu2 %v358_v22  ;;  %v601_v60 = vld [vmem:[#allocation5 + $0x830] sm:$0xff]  ;;  %v706_v59 = vld [vmem:[#allocation5 + $0xb78] sm:$0xff]  ;;  %v2246_v22 = vpop.f32.mrf.mxu1 }
 0x124   : > { %1180 = vmatpush.msra.mxu3 %v426_v23  ;;  %1028 = vmatmul.f32.gmra.mxu0 %v2187_v6  ;;  %v669_v34 = vld [vmem:[#allocation5 + $0xa50] sm:$0xff]  ;;  %v506_v61 = vld [vmem:[#allocation5 + $0x538] sm:$0xff]  ;;  %v2248_v23 = vpop.f32.mrf.mxu2 }
 0x125   : > { %1094 = vmatmul.f32.vlgmr.msrb.gmra.mxu3 %v2184_v3  ;;  %1113 = vmatpush.msra.mxu0 %v609_v55  ;;  %v597_v6 = vld [vmem:[#allocation5 + $0x810] sm:$0xff]  ;;  %v574_v62 = vld [vmem:[#allocation5 + $0x758] sm:$0xff]  ;;  %v1712_v55 = vld [vmem:[%s2157_s27 + $0x8] sm:$0xff] }
 0x126   : > { %1135 = vmatpush.msra.mxu1 %v677_v24  ;;  %1159 = vmatpush.msra.mxu2 %v354_v27  ;;  %v665_v3 = vld [vmem:[#allocation5 + $0xa30] sm:$0xff]  ;;  %v634_v0 = vld [vmem:[#allocation5 + $0x938] sm:$0xff] }
 0x127   : > { %1181 = vmatpush.msra.mxu3 %v422_v28  ;;  %1051 = vmatmul.f32.gmra.mxu1 %v2191_v11  ;;  %v530_v11 = vld [vmem:[#allocation5 + $0x5f8] sm:$0xff]  ;;  %v661_v40 = vld [vmem:[#allocation5 + $0xa10] sm:$0xff] }
 0x128   : > { %1114 = vmatpush.msra.mxu0 %v605_v29  ;;  %1136 = vmatpush.msra.mxu1 %v673_v30  ;;  %v702_v1 = vld [vmem:[#allocation5 + $0xb58] sm:$0xff] }
 0x129   : > { %1160 = vmatpush.msra.mxu2 %v350_v32  ;;  %1182 = vmatpush.msra.mxu3 %v418_v33  ;;  %v502_v2 = vld [vmem:[#allocation5 + $0x518] sm:$0xff] }
 0x12a   : > { %1115 = vmatpush.msra.mxu0 %v601_v60  ;;  %1137 = vmatpush.msra.mxu1 %v669_v34  ;;  %v570_v4 = vld [vmem:[#allocation5 + $0x738] sm:$0xff] }
 0x12b   : > { %1161 = vmatpush.msra.mxu2 %v346_v35  ;;  %1183 = vmatpush.msra.mxu3 %v414_v36  ;;  %v630_v7 = vld [vmem:[#allocation5 + $0x918] sm:$0xff] }
 0x12c   : > { %1074 = vmatmul.f32.gmra.mxu2 %v2196_v20  ;;  %1116 = vmatpush.msra.mxu0 %v597_v6  ;;  %v522_v20 = vld [vmem:[#allocation5 + $0x5b8] sm:$0xff] }
 0x12d   : > { %1138 = vmatpush.msra.mxu1 %v665_v3  ;;  %1162 = vmatpush.msra.mxu2 %v342_v37  ;;  %v698_v8 = vld [vmem:[#allocation5 + $0xb38] sm:$0xff]  ;;  %v1713_v3 = vld [vmem:[%s2157_s27 + $0x30] sm:$0xff] }
 0x12e   : > { %1184 = vmatpush.msra.mxu3 %v410_v38  ;;  %1117 = vmatmul.f32.vlgmr.msra.gmra.mxu0 %v2199_v25  ;;  %v518_v25 = vld [vmem:[#allocation5 + $0x598] sm:$0xff] }
 0x12f   : > { %1097 = vmatmul.f32.gmra.mxu3 %v2203_v26  ;;  %1193 = vmatpush.msrb.mxu0 %v530_v11  ;;  %v586_v26 = vld [vmem:[#allocation5 + $0x7b8] sm:$0xff] }
 0x130   : > { %1239 = vmatpush.msrb.mxu2 %v658_v39  ;;  %1139 = vmatpush.msra.mxu1 %v661_v40  ;;  %v498_v9 = vld [vmem:[#allocation5 + $0x4f8] sm:$0xff] }
 0x131   : > { %1185 = vmatpush.msra.mxu3 %v406_v41  ;;  %1140 = vmatmul.f32.vlgmr.msra.gmra.mxu1 %v2207_v31  ;;  %v514_v31 = vld [vmem:[#allocation5 + $0x578] sm:$0xff] }
 0x132   : > { %1194 = vmatpush.msrb.mxu0 %v526_v42  ;;  %1216 = vmatpush.msrb.mxu1 %v594_v43  ;;  %v566_v10 = vld [vmem:[#allocation5 + $0x718] sm:$0xff] }
 0x133   : > { %1240 = vmatpush.msrb.mxu2 %v654_v44  ;;  %1262 = vmatpush.msrb.mxu3 %v722_v45  ;;  %v626_v12 = vld [vmem:[#allocation5 + $0x8f8] sm:$0xff] }
 0x134   : > { %1195 = vmatpush.msrb.mxu0 %v522_v20  ;;  %1217 = vmatpush.msrb.mxu1 %v590_v46  ;;  %v694_v13 = vld [vmem:[#allocation5 + $0xb18] sm:$0xff] }
 0x135   : > { %1241 = vmatpush.msrb.mxu2 %v650_v47  ;;  %1263 = vmatpush.msrb.mxu3 %v718_v48  ;;  %v494_v14 = vld [vmem:[#allocation5 + $0x4d8] sm:$0xff] }
 0x136   : > { %1196 = vmatpush.msrb.mxu0 %v518_v25  ;;  %1218 = vmatpush.msrb.mxu1 %v586_v26  ;;  %v562_v17 = vld [vmem:[#allocation5 + $0x6f8] sm:$0xff] }
 0x137   : > { %1242 = vmatpush.msrb.mxu2 %v646_v49  ;;  %1264 = vmatpush.msrb.mxu3 %v714_v51  ;;  %v2243_v15 = vpop.f32.mrf.mxu0  ;;  %v622_v18 = vld [vmem:[#allocation5 + $0x8d8] sm:$0xff] }
 0x138   : > { %1120 = vmatmul.f32.gmra.mxu0 %v2214_v63  ;;  %1219 = vmatpush.msrb.mxu1 %v582_v52  ;;  %v690_v19 = vld [vmem:[#allocation5 + $0xaf8] sm:$0xff]  ;;  %v2263_v52 = vld [vmem:[#allocation7] sm:$0xf] }
 0x139   : > { %1197 = vmatpush.msrb.mxu0 %v514_v31  ;;  %1243 = vmatpush.msrb.mxu2 %v642_v53  ;;  %v490_v21 = vld [vmem:[#allocation5 + $0x4b8] sm:$0xff]  ;;  %v1715_v53 = vld [vmem:[%s2157_s27 + $0x10] sm:$0xff] }
 0x13a   : > { %1265 = vmatpush.msrb.mxu3 %v710_v54  ;;  %1143 = vmatmul.f32.gmra.mxu1 %v2219_v5  ;;  %v558_v50 = vld [vmem:[#allocation5 + $0x6d8] sm:$0xff]  ;;  %v2257_v45 = vpop.f32.mrf.mxu1  ;;  %v1716_v54 = vld [vmem:[%s2157_s27 + $0x20] sm:$0xff] }
 0x13b   : > { %1198 = vmatpush.msrb.mxu0 %v510_v56  ;;  %1220 = vmatpush.msrb.mxu1 %v578_v57  ;;  %v618_v24 = vld [vmem:[#allocation5 + $0x8b8] sm:$0xff] }
 0x13c   : > { %1244 = vmatpush.msrb.mxu2 %v638_v58  ;;  %1266 = vmatpush.msrb.mxu3 %v706_v59  ;;  %v686_v27 = vld [vmem:[#allocation5 + $0xad8] sm:$0xff]  ;;  %v725_v59 = vperm.slane %v2263_v52, 0 }
 0x13d   : > { %1199 = vmatpush.msrb.mxu0 %v506_v61  ;;  %1221 = vmatpush.msrb.mxu1 %v574_v62  ;;  %v486_v28 = vld [vmem:[#allocation5 + $0x498] sm:$0xff]  ;;  %v1306_v62 = vld [vmem:[#allocation8 + $0x68] sm:$0xff] }
 0x13e   : > { %1245 = vmatpush.msrb.mxu2 %v634_v0  ;;  %1267 = vmatpush.msrb.mxu3 %v702_v1  ;;  %v554_v29 = vld [vmem:[#allocation5 + $0x6b8] sm:$0xff]  ;;  %v1718_v0 = vld [vmem:[%s2157_s27 + $0x28] sm:$0xff] }
 0x13f   : > { %1200 = vmatpush.msrb.mxu0 %v502_v2  ;;  %1222 = vmatpush.msrb.mxu1 %v570_v4  ;;  %v614_v30 = vld [vmem:[#allocation5 + $0x898] sm:$0xff]  ;;  %v1305_v2 = vld [vmem:[#allocation8 + $0x60] sm:$0xff] }
 0x140   : > { %1246 = vmatpush.msrb.mxu2 %v630_v7  ;;  %1268 = vmatpush.msrb.mxu3 %v698_v8  ;;  %v682_v32 = vld [vmem:[#allocation5 + $0xab8] sm:$0xff]  ;;  %v2254_v38 = vpop.f32.mrf.mxu0  ;;  %v751_v8 = vadd.f32 %v2243_v15, %v725_v59 }
 0x141   : > { %1163 = vmatmul.f32.vlgmr.msra.gmra.mxu2 %v1711_v16  ;;  %1201 = vmatpush.msrb.mxu0 %v498_v9  ;;  %v482_v60 = vld [vmem:[#allocation5 + $0x478] sm:$0xff]  ;;  %v726_v16 = vperm.slane %v2263_v52, 1 }
 0x142   : > { %1223 = vmatpush.msrb.mxu1 %v566_v10  ;;  %1247 = vmatpush.msrb.mxu2 %v626_v12  ;;  %v550_v34 = vld [vmem:[#allocation5 + $0x698] sm:$0xff]  ;;  %v1322_v10 = vld [vmem:[#allocation8 + $0xe8] sm:$0xff]  ;;  %v774_v15 = vadd.f32 %v2246_v22, %v751_v8 }
 0x143   : > { %1269 = vmatpush.msrb.mxu3 %v694_v13  ;;  %1202 = vmatpush.msrb.mxu0 %v494_v14  ;;  %v610_v35 = vld [vmem:[#allocation5 + $0x878] sm:$0xff]  ;;  %v1719_v13 = vld [vmem:[%s2157_s27 + $0x40] sm:$0xff]  ;;  %v1310_v8 = vld [vmem:[#allocation8 + $0x88] sm:$0xff] }
 0x144   : > { %1186 = vmatmul.f32.vlgmr.msra.gmra.mxu3 %v1712_v55  ;;  %1224 = vmatpush.msrb.mxu1 %v562_v17  ;;  %v2251_v33 = vpop.f32.mrf.mxu3  ;;  %v678_v36 = vld [vmem:[#allocation5 + $0xa98] sm:$0xff]  ;;  %v1321_v17 = vld [vmem:[#allocation8 + $0xe0] sm:$0xff]  ;;  %v754_v55 = vadd.f32 %v2254_v38, %v725_v59  ;;  %v797_v22 = vadd.f32 %v2248_v23, %v774_v15 }
 0x145   : > { %1248 = vmatpush.msrb.mxu2 %v622_v18  ;;  %1270 = vmatpush.msrb.mxu3 %v690_v19  ;;  %v478_v6 = vld [vmem:[#allocation5 + $0x458] sm:$0xff]  ;;  %v1720_v19 = vld [vmem:[%s2157_s27 + $0x48] sm:$0xff] }
 0x146   : > { %1203 = vmatpush.msrb.mxu0 %v490_v21  ;;  %1225 = vmatpush.msrb.mxu1 %v558_v50  ;;  %v546_v37 = vld [vmem:[#allocation5 + $0x678] sm:$0xff]  ;;  %v1302_v21 = vld [vmem:[#allocation8 + $0x48] sm:$0xff]  ;;  %v1337_v38 = vld [vmem:[#allocation8 + $0x160] sm:$0xff] }
 0x147   : > { %1249 = vmatpush.msrb.mxu2 %v618_v24  ;;  %1271 = vmatpush.msrb.mxu3 %v686_v27  ;;  %v606_v11 = vld [vmem:[#allocation5 + $0x858] sm:$0xff] }
 0x148   : > { %1204 = vmatpush.msrb.mxu0 %v486_v28  ;;  %1226 = vmatpush.msrb.mxu1 %v554_v29  ;;  %v674_v39 = vld [vmem:[#allocation5 + $0xa78] sm:$0xff] }
 0x149   : > { %1250 = vmatpush.msrb.mxu2 %v614_v30  ;;  %1272 = vmatpush.msrb.mxu3 %v682_v32  ;;  %v474_v40 = vld [vmem:[#allocation5 + $0x438] sm:$0xff]  ;;  %v2267_v57 = vpop.f32.mrf.mxu0 }
 0x14a   : > { %1166 = vmatmul.f32.gmra.mxu2 %v1713_v3  ;;  %1205 = vmatpush.msrb.mxu0 %v482_v60  ;;  %v542_v41 = vld [vmem:[#allocation5 + $0x658] sm:$0xff] }
 0x14b   : > { %1227 = vmatpush.msrb.mxu1 %v550_v34  ;;  %1251 = vmatpush.msrb.mxu2 %v610_v35  ;;  %v1714_v42 = vld [vmem:[%s2157_s27 + $0x38] sm:$0xff]  ;;  %v1338_v34 = vld [vmem:[#allocation8 + $0x168] sm:$0xff]  ;;  %v777_v35 = vadd.f32 %v2257_v45, %v754_v55 }
 0x14c   : > { %1273 = vmatpush.msrb.mxu3 %v678_v36  ;;  %1206 = vmatpush.msrb.mxu0 %v478_v6  ;;  %v602_v43 = vld [vmem:[#allocation5 + $0x838] sm:$0xff]  ;;  %v2272_v4 = vpop.f32.mrf.mxu1 }
 0x14d   : > { %1189 = vmatmul.f32.gmra.mxu3 %v1714_v42  ;;  %1228 = vmatpush.msrb.mxu1 %v546_v37  ;;  %v670_v44 = vld [vmem:[#allocation5 + $0xa58] sm:$0xff]  ;;  %v2259_v20 = vpop.f32.mrf.mxu2  ;;  %v1317_v37 = vld [vmem:[#allocation8 + $0xc0] sm:$0xff] }
 0x14e   : > { %1252 = vmatpush.msrb.mxu2 %v606_v11  ;;  %1274 = vmatpush.msrb.mxu3 %v674_v39  ;;  %v470_v46 = vld [vmem:[#allocation5 + $0x418] sm:$0xff]  ;;  %v820_v11 = vadd.f32 %v2251_v33, %v797_v22  ;;  %v1298_v39 = vld [vmem:[#allocation8 + $0x28] sm:$0xff]  ;;  %v1297_v42 = vld [vmem:[#allocation8 + $0x20] sm:$0xff] }
 0x14f   : > { %v538_v47 = vld [vmem:[#allocation5 + $0x638] sm:$0xff]  ;;  %1207 = vmatpush.msrb.mxu0 %v474_v40  ;;  %1229 = vmatpush.msrb.mxu1 %v542_v41  ;;  %v800_v41 = vadd.f32 %v2259_v20, %v777_v35  ;;  %v1313_v20 = vld [vmem:[#allocation8 + $0xa0] sm:$0xff]  ;;  %v1326_v22 = vld [vmem:[#allocation8 + $0x108] sm:$0xff] }
 0x150   : > { %v598_v48 = vld [vmem:[#allocation5 + $0x818] sm:$0xff]  ;;  %1253 = vmatpush.msrb.mxu2 %v602_v43  ;;  %1275 = vmatpush.msrb.mxu3 %v670_v44  ;;  %v2261_v26 = vpop.f32.mrf.mxu3  ;;  %v843_v45 = vadd.f32 %v2267_v57, %v820_v11 }
 0x151   : > { %v666_v25 = vld [vmem:[#allocation5 + $0xa38] sm:$0xff]  ;;  %1208 = vmatpush.msrb.mxu0 %v470_v46  ;;  %1230 = vmatpush.msrb.mxu1 %v538_v47 }
 0x152   : > { %v1308_v49 = vld [vmem:[#allocation8 + $0x78] sm:$0xff]  ;;  %1254 = vmatpush.msrb.mxu2 %v598_v48  ;;  %1276 = vmatpush.msrb.mxu3 %v666_v25  ;;  %v1307_v56 = vld [vmem:[#allocation8 + $0x70] sm:$0xff]  ;;  %v1314_v48 = vld [vmem:[#allocation8 + $0xa8] sm:$0xff] }
 0x153   : > { %v534_v51 = vld [vmem:[#allocation5 + $0x618] sm:$0xff]  ;;  %1209 = vmatmul.f32.vlgmr.msrb.gmra.mxu0 %v1715_v53  ;;  %1255 = vmatmul.f32.vlgmr.msrb.gmra.mxu2 %v1716_v54  ;;  %v866_v54 = vadd.f32 %v2272_v4, %v843_v45 }
 0x154   : > { %v662_v31 = vld [vmem:[#allocation5 + $0xa18] sm:$0xff]  ;;  %1361 = vmatpush.msra.mxu0 %v1308_v49  ;;  %1231 = vmatpush.msrb.mxu1 %v534_v51  ;;  %v823_v51 = vadd.f32 %v2261_v26, %v800_v41 }
 0x155   : > { %v1324_v58 = vld [vmem:[#allocation8 + $0xf8] sm:$0xff]  ;;  %1277 = vmatpush.msrb.mxu3 %v662_v31  ;;  %v1323_v1 = vld [vmem:[#allocation8 + $0xf0] sm:$0xff] }
 0x156   : > { %v1717_v61 = vld [vmem:[%s2157_s27 + $0x18] sm:$0xff]  ;;  %1278 = vmatmul.f32.vlgmr.msrb.gmra.mxu3 %v1718_v0  ;;  %1362 = vmatpush.msra.mxu0 %v1307_v56  ;;  %v1294_v56 = vld [vmem:[#allocation8 + $0x8] sm:$0xff] }
 0x157   : > { %1232 = vmatmul.f32.vlgmr.msrb.gmra.mxu1 %v1717_v61  ;;  %v888_v7 = vpop.f32.mrf.mxu2  ;;  %v1304_v9 = vld [vmem:[#allocation8 + $0x58] sm:$0xff]  ;;  %v1303_v14 = vld [vmem:[#allocation8 + $0x50] sm:$0xff] }
 0x158   : > { %1384 = vmatpush.msra.mxu1 %v1324_v58  ;;  %1363 = vmatpush.msra.mxu0 %v1306_v62  ;;  %v1320_v50 = vld [vmem:[#allocation8 + $0xd8] sm:$0xff]  ;;  %v889_v24 = vadd.f32 %v888_v7, %v726_v16  ;;  %v1319_v28 = vld [vmem:[#allocation8 + $0xd0] sm:$0xff]  ;;  %v1293_v62 = vld [vmem:[#allocation8] sm:$0xff] }
 0x159   : > { %v1340_v30 = vld [vmem:[#allocation8 + $0x178] sm:$0xff]  ;;  %v1339_v32 = vld [vmem:[#allocation8 + $0x170] sm:$0xff] }
 0x15a   : > { %1385 = vmatpush.msra.mxu1 %v1323_v1  ;;  %1364 = vmatpush.msra.mxu0 %v1305_v2  ;;  %v911_v12 = vpop.f32.mrf.mxu3  ;;  %v1300_v60 = vld [vmem:[#allocation8 + $0x38] sm:$0xff]  ;;  %v1299_v36 = vld [vmem:[#allocation8 + $0x30] sm:$0xff]  ;;  %v1285_v2 = vmax.f32 %v866_v54, 0.0 }
 0x15b   : > { %1212 = vmatmul.f32.gmra.mxu0 %v1719_v13  ;;  %1258 = vmatmul.f32.gmra.mxu2 %v2214_v63  ;;  %v1301_v63 = vld [vmem:[#allocation8 + $0x40] sm:$0xff]  ;;  %v912_v6 = vadd.f32 %v911_v12, %v889_v24  ;;  %v1316_v23 = vld [vmem:[#allocation8 + $0xb8] sm:$0xff]  ;;  %v1315_v44 = vld [vmem:[#allocation8 + $0xb0] sm:$0xff] }
 0x15c   : > { %1365 = vmatpush.msra.mxu0 %v1304_v9  ;;  %1386 = vmatpush.msra.mxu1 %v1322_v10  ;;  %v2278_v18 = vpop.f32.mrf.mxu0  ;;  %v1296_v46 = vld [vmem:[#allocation8 + $0x18] sm:$0xff]  ;;  %v1295_v31 = vld [vmem:[#allocation8 + $0x10] sm:$0xff]  ;;  %v1309_v13 = vld [vmem:[#allocation8 + $0x80] sm:$0xff] }
 0x15d   : > { %1407 = vmatpush.msra.mxu2 %v1340_v30  ;;  %v1312_v59 = vld [vmem:[#allocation8 + $0x98] sm:$0xff]  ;;  %v846_v61 = vadd.f32 %v2278_v18, %v823_v51  ;;  %v1311_v26 = vld [vmem:[#allocation8 + $0x90] sm:$0xff] }
 0x15e   : > { %1281 = vmatmul.f32.gmra.mxu3 %v2219_v5  ;;  %1366 = vmatpush.msra.mxu0 %v1303_v14  ;;  %v1318_v5 = vld [vmem:[#allocation8 + $0xc8] sm:$0xff]  ;;  %v1332_v24 = vld [vmem:[#allocation8 + $0x138] sm:$0xff]  ;;  %v1351_v45 = vld [vmem:[#allocation8 + $0x1d0] sm:$0xff] }
 0x15f   : > { %1235 = vmatmul.f32.gmra.mxu1 %v1720_v19  ;;  %v2284_v27 = vpop.f32.mrf.mxu1  ;;  %1408 = vmatpush.msra.mxu2 %v1339_v32  ;;  %v1336_v19 = vld [vmem:[#allocation8 + $0x158] sm:$0xff]  ;;  %v1327_v32 = vld [vmem:[#allocation8 + $0x110] sm:$0xff] }
 0x160   : > { %1387 = vmatpush.msra.mxu1 %v1321_v17  ;;  %1367 = vmatpush.msra.mxu0 %v1302_v21  ;;  %v891_v29 = vpop.f32.mrf.mxu2  ;;  %v869_v4 = vadd.f32 %v2284_v27, %v846_v61  ;;  %v1335_v21 = vld [vmem:[#allocation8 + $0x150] sm:$0xff]  ;;  %v1328_v30 = vld [vmem:[#allocation8 + $0x118] sm:$0xff] }
 0x161   : > { %1409 = vmatpush.msra.mxu2 %v1338_v34  ;;  %v892_v47 = vadd.f32 %v891_v29, %v726_v16  ;;  %v1331_v27 = vld [vmem:[#allocation8 + $0x130] sm:$0xff]  ;;  %v1329_v29 = vld [vmem:[#allocation8 + $0x120] sm:$0xff]  ;;  %v727_v34 = vperm.slane %v2263_v52, 2  ;;  %v1352_v41 = vld [vmem:[#allocation8 + $0x1d8] sm:$0xff] }
 0x162   : > { %1388 = vmatpush.msra.mxu1 %v1320_v50  ;;  %1368 = vmatpush.msra.mxu0 %v1301_v63  ;;  %v1289_v17 = vmax.f32 %v869_v4, 0.0  ;;  %v1334_v50 = vld [vmem:[#allocation8 + $0x148] sm:$0xff]  ;;  %v1333_v63 = vld [vmem:[#allocation8 + $0x140] sm:$0xff] }
 0x163   : > { %v914_v3 = vpop.f32.mrf.mxu3  ;;  %1410 = vmatpush.msra.mxu2 %v1337_v38  ;;  %v1353_v38 = vld [vmem:[#allocation8 + $0x1e0] sm:$0xff] }
 0x164   : > { %1389 = vmatpush.msra.mxu1 %v1319_v28  ;;  %1369 = vmatpush.msra.mxu0 %v1300_v60  ;;  %v915_v58 = vadd.f32 %v914_v3, %v892_v47  ;;  %v1330_v28 = vld [vmem:[#allocation8 + $0x128] sm:$0xff]  ;;  %v1325_v60 = vld [vmem:[#allocation8 + $0x100] sm:$0xff] }
 0x165   : > { %1411 = vmatpush.msra.mxu2 %v1336_v19  ;;  %v1354_v3 = vld [vmem:[#allocation8 + $0x1e8] sm:$0xff] }
 0x166   : > { %1390 = vmatpush.msra.mxu1 %v1318_v5  ;;  %1370 = vmatpush.msra.mxu0 %v1299_v36  ;;  %v934_v40 = vpop.f32.mrf.mxu0  ;;  %v1356_v36 = vld [vmem:[#allocation8 + $0x1f8] sm:$0xff] }
 0x167   : > { %v935_v43 = vadd.f32 %v934_v40, %v912_v6  ;;  %1412 = vmatpush.msra.mxu2 %v1335_v21  ;;  %1430 = vmatpush.msra.mxu3 %v1356_v36  ;;  %v1355_v6 = vld [vmem:[#allocation8 + $0x1f0] sm:$0xff] }
 0x168   : > { %1391 = vmatpush.msra.mxu1 %v1317_v37  ;;  %1371 = vmatpush.msra.mxu0 %v1298_v39 }
 0x169   : > { %v957_v33 = vpop.f32.mrf.mxu1  ;;  %1413 = vmatpush.msra.mxu2 %v1334_v50  ;;  %1431 = vmatpush.msra.mxu3 %v1355_v6 }
 0x16a   : > { %1392 = vmatpush.msra.mxu1 %v1316_v23  ;;  %1372 = vmatpush.msra.mxu0 %v1297_v42  ;;  %v958_v25 = vadd.f32 %v957_v33, %v935_v43  ;;  %v980_v49 = vpop.f32.mrf.mxu2  ;;  %v1349_v33 = vld [vmem:[#allocation8 + $0x1c0] sm:$0xff] }
 0x16b   : > { %1414 = vmatpush.msra.mxu2 %v1333_v63  ;;  %1432 = vmatpush.msra.mxu3 %v1354_v3 }
 0x16c   : > { %1393 = vmatpush.msra.mxu1 %v1315_v44  ;;  %1373 = vmatpush.msra.mxu0 %v1296_v46  ;;  %v981_v53 = vadd.f32 %v980_v49, %v958_v25  ;;  %v1350_v46 = vld [vmem:[#allocation8 + $0x1c8] sm:$0xff] }
 0x16d   : > { %v1003_v57 = vpop.f32.mrf.mxu3  ;;  %1415 = vmatpush.msra.mxu2 %v1332_v24  ;;  %1433 = vmatpush.msra.mxu3 %v1353_v38 }
 0x16e   : > { %1394 = vmatpush.msra.mxu1 %v1314_v48  ;;  %1374 = vmatpush.msra.mxu0 %v1295_v31  ;;  %v1004_v0 = vadd.f32 %v1003_v57, %v981_v53  ;;  %v1348_v31 = vld [vmem:[#allocation8 + $0x1b8] sm:$0xff] }
 0x16f   : > { %1416 = vmatpush.msra.mxu2 %v1331_v27  ;;  %1434 = vmatpush.msra.mxu3 %v1352_v41 }
 0x170   : > { %1395 = vmatpush.msra.mxu1 %v1313_v20  ;;  %1375 = vmatpush.msra.mxu0 %v1294_v56  ;;  %v937_v1 = vpop.f32.mrf.mxu0  ;;  %v1286_v10 = vmax.f32 %v1004_v0, 0.0  ;;  %v1347_v56 = vld [vmem:[#allocation8 + $0x1b0] sm:$0xff] }
 0x171   : > { %v938_v7 = vadd.f32 %v937_v1, %v915_v58  ;;  %1417 = vmatpush.msra.mxu2 %v1330_v28  ;;  %1435 = vmatpush.msra.mxu3 %v1351_v45  ;;  %v1344_v1 = vld [vmem:[#allocation8 + $0x198] sm:$0xff] }
 0x172   : > { %1396 = vmatpush.msra.mxu1 %v1312_v59  ;;  %1376 = vmatpush.msra.mxu0 %v1293_v62  ;;  %v1346_v59 = vld [vmem:[#allocation8 + $0x1a8] sm:$0xff]  ;;  %v1345_v62 = vld [vmem:[#allocation8 + $0x1a0] sm:$0xff] }
 0x173   : > { %1377 = vmatmul.f32.vlgmr.msra.gmra.mxu0 %v1285_v2  ;;  %v960_v9 = vpop.f32.mrf.mxu1  ;;  %1418 = vmatpush.msra.mxu2 %v1329_v29 }
 0x174   : > { %1397 = vmatpush.msra.mxu1 %v1311_v26  ;;  %v961_v12 = vadd.f32 %v960_v9, %v938_v7  ;;  %v983_v14 = vpop.f32.mrf.mxu2  ;;  %1436 = vmatpush.msra.mxu3 %v1350_v46  ;;  %v1342_v9 = vld [vmem:[#allocation8 + $0x188] sm:$0xff] }
 0x175   : > { %1419 = vmatpush.msra.mxu2 %v1328_v30 }
 0x176   : > { %1398 = vmatpush.msra.mxu1 %v1310_v8  ;;  %v984_v16 = vadd.f32 %v983_v14, %v961_v12  ;;  %1437 = vmatpush.msra.mxu3 %v1349_v33  ;;  %v1343_v8 = vld [vmem:[#allocation8 + $0x190] sm:$0xff] }
 0x177   : > { %v1006_v18 = vpop.f32.mrf.mxu3  ;;  %1420 = vmatpush.msra.mxu2 %v1327_v32 }
 0x178   : > { %1399 = vmatpush.msra.mxu1 %v1309_v13  ;;  %v1007_v15 = vadd.f32 %v1006_v18, %v984_v16  ;;  %1438 = vmatpush.msra.mxu3 %v1348_v31  ;;  %v728_v13 = vperm.slane %v2263_v52, 3 }
 0x179   : > { %1400 = vmatmul.f32.vlgmr.msra.gmra.mxu1 %v1286_v10  ;;  %1421 = vmatpush.msra.mxu2 %v1326_v22  ;;  %v1341_v10 = vld [vmem:[#allocation8 + $0x180] sm:$0xff] }
 0x17a   : > { %v1290_v55 = vmax.f32 %v1007_v15, 0.0  ;;  %1439 = vmatpush.msra.mxu3 %v1347_v56 }
 0x17b   : > { %1380 = vmatmul.f32.gmra.mxu0 %v1289_v17  ;;  %1422 = vmatpush.msra.mxu2 %v1325_v60 }
 0x17c   : > { %1440 = vmatpush.msra.mxu3 %v1346_v59 }
 0x17e   : > { %1441 = vmatpush.msra.mxu3 %v1345_v62 }
 0x180   : > { %1442 = vmatpush.msra.mxu3 %v1344_v1 }
 0x181   : > { %1403 = vmatmul.f32.gmra.mxu1 %v1290_v55 }
 0x182   : > { %1443 = vmatpush.msra.mxu3 %v1343_v8 }
 0x184   : > { %1444 = vmatpush.msra.mxu3 %v1342_v9 }
 0x186   : > { %1445 = vmatpush.msra.mxu3 %v1341_v10 }
 0x198   : > { %v1026_v5 = vpop.f32.mrf.mxu0 }
 0x199   : > { %v1027_v37 = vadd.f32 %v1026_v5, %v727_v34 }
 0x19a   : > { %v1049_v35 = vpop.f32.mrf.mxu1 }
 0x19b   : > { %v1050_v39 = vadd.f32 %v1049_v35, %v1027_v37  ;;  %v1710_v37 = vld [vmem:[#allocation10] ss:$0 sm:$0xff] }
 0x1a1   : > { %v1029_v11 = vpop.f32.mrf.mxu0 }
 0x1a2   : > { %v1030_v43 = vadd.f32 %v1029_v11, %v727_v34 }
 0x1a4   : > { %v1052_v23 = vpop.f32.mrf.mxu1 }
 0x1a5   : > { %v1072_v40 = vpop.f32.mrf.mxu2  ;;  %v1053_v25 = vadd.f32 %v1052_v23, %v1030_v43 }
 0x1a6   : > { %v1073_v42 = vadd.f32 %v1072_v40, %v1050_v39 }
 0x1a8   : > { %v1095_v44 = vpop.f32.mrf.mxu3 }
 0x1a9   : > { %v1096_v47 = vadd.f32 %v1095_v44, %v1073_v42 }
 0x1ab   : > { %v1118_v48 = vpop.f32.mrf.mxu0 }
 0x1ac   : > { %v1119_v49 = vadd.f32 %v1118_v48, %v1096_v47 }
 0x1ae   : > { %v1141_v51 = vpop.f32.mrf.mxu1 }
 0x1af   : > { %v1142_v20 = vadd.f32 %v1141_v51, %v1119_v49  ;;  %v1075_v53 = vpop.f32.mrf.mxu2 }
 0x1b0   : > { %v1076_v54 = vadd.f32 %v1075_v53, %v1053_v25 }
 0x1b1   : > { %v1287_v58 = vmax.f32 %v1142_v20, 0.0 }
 0x1b2   : > { %v1098_v57 = vpop.f32.mrf.mxu3 }
 0x1b3   : > { %v1099_v61 = vadd.f32 %v1098_v57, %v1076_v54  ;;  %1423 = vmatmul.f32.vlgmr.msra.gmra.mxu2 %v1287_v58 }
 0x1b5   : > { %v1121_v0 = vpop.f32.mrf.mxu0 }
 0x1b6   : > { %v1122_v26 = vadd.f32 %v1121_v0, %v1099_v61 }
 0x1b7   : > { %v1144_v2 = vpop.f32.mrf.mxu1 }
 0x1b8   : > { %v1145_v7 = vadd.f32 %v1144_v2, %v1122_v26 }
 0x1ba   : > { %v1291_v4 = vmax.f32 %v1145_v7, 0.0 }
 0x1bc   : > { %1426 = vmatmul.f32.gmra.mxu2 %v1291_v4 }
 0x1c4   : > { %v1164_v12 = vpop.f32.mrf.mxu2 }
 0x1c5   : > { %v1165_v16 = vadd.f32 %v1164_v12, %v728_v13 }
 0x1c7   : > { %v1187_v14 = vpop.f32.mrf.mxu3 }
 0x1c8   : > { %v1188_v18 = vadd.f32 %v1187_v14, %v1165_v16 }
 0x1cd   : > { %v1167_v17 = vpop.f32.mrf.mxu2 }
 0x1ce   : > { %v1168_v55 = vadd.f32 %v1167_v17, %v728_v13 }
 0x1d0   : > { %v1190_v15 = vpop.f32.mrf.mxu3  ;;  %v1210_v19 = vpop.f32.mrf.mxu0 }
 0x1d1   : > { %v1211_v21 = vadd.f32 %v1210_v19, %v1188_v18  ;;  %v1191_v27 = vadd.f32 %v1190_v15, %v1168_v55 }
 0x1d4   : > { %v1233_v50 = vpop.f32.mrf.mxu1 }
 0x1d5   : > { %v1234_v63 = vadd.f32 %v1233_v50, %v1211_v21 }
 0x1d6   : > { %v1256_v24 = vpop.f32.mrf.mxu2 }
 0x1d7   : > { %v1257_v28 = vadd.f32 %v1256_v24, %v1234_v63 }
 0x1d8   : > { %v1213_v29 = vpop.f32.mrf.mxu0 }
 0x1d9   : > { %v1214_v30 = vadd.f32 %v1213_v29, %v1191_v27  ;;  %v1279_v32 = vpop.f32.mrf.mxu3 }
 0x1da   : > { %v1280_v22 = vadd.f32 %v1279_v32, %v1257_v28 }
 0x1dc   : > { %v1236_v60 = vpop.f32.mrf.mxu1  ;;  %v1288_v52 = vmax.f32 %v1280_v22, 0.0 }
 0x1dd   : > { %v1237_v5 = vadd.f32 %v1236_v60, %v1214_v30 }
 0x1de   : > { %1446 = vmatmul.f32.vlgmr.msra.gmra.mxu3 %v1288_v52  ;;  %v1259_v34 = vpop.f32.mrf.mxu2 }
 0x1df   : > { %v1260_v35 = vadd.f32 %v1259_v34, %v1237_v5 }
 0x1e1   : > { %v1282_v36 = vpop.f32.mrf.mxu3 }
 0x1e2   : > { %v1283_v6 = vadd.f32 %v1282_v36, %v1260_v35 }
 0x1e4   : > { %v1292_v3 = vmax.f32 %v1283_v6, 0.0 }
 0x1e6   : > { %1449 = vmatmul.f32.gmra.mxu3 %v1292_v3 }
 0x1f0   : > { %v1378_v38 = vpop.f32.mrf.mxu0 }
 0x1f1   : > { %v1379_v23 = vadd.f32 %v1710_v37, %v1378_v38 }
 0x1f6   : > { %v1401_v11 = vpop.f32.mrf.mxu1 }
 0x1f7   : > { %v1402_v40 = vadd.f32 %v1401_v11, %v1379_v23 }
 0x1f8   : > { %v1381_v42 = vpop.f32.mrf.mxu0 }
 0x1f9   : > { %v1382_v46 = vadd.f32 %v1710_v37, %v1381_v42 }
 0x1fe   : > { %v1404_v45 = vpop.f32.mrf.mxu1 }
 0x1ff   : > { %v1405_v33 = vadd.f32 %v1404_v45, %v1382_v46 }
 0x236   : > { %v1424_v39 = vpop.f32.mrf.mxu2 }
 0x237   : > { %v1425_v41 = vadd.f32 %v1424_v39, %v1402_v40 }
 0x23f   : > { %v1427_v47 = vpop.f32.mrf.mxu2 }
 0x240   : > { %v1428_v48 = vadd.f32 %v1427_v47, %v1405_v33 }
 0x261   : > { %v1447_v43 = vpop.f32.mrf.mxu3 }
 0x262   : > { %v1448_v44 = vadd.f32 %v1447_v43, %v1425_v41 }
 0x264   : > { %1453 = vst [vmem:[%s315_s7] sm:$0xff] %v1448_v44 }
 0x268   : > { %1462 = sbr.rel (!%p2063_p11) target bundleno = 652 (0x28c), region = 64 }
 0x269   : > { %v1450_v25 = vpop.f32.mrf.mxu3 }
 0x26a   : > { %v1451_v49 = vadd.f32 %v1450_v25, %v1428_v48 }
 0x26c   : > { %1454 = vst [vmem:[%s315_s7 + $0x8] sm:$0xff] %v1451_v49 }
 0x26d   : > { %s2403_s26 = smov (!%p1465_p6, %s1464_s26), 2 }
 0x26e   : > { %s1611_s8 = sshll.u32 %s2403_s26, 3 }
 0x26f   : > { %s1468_s15 = ssub.s32 16, %s1611_s8 }
 0x270   : > { %s1469_s16 = sshll.u32 %s1468_s15, 4 }
 0x271   : > { %1470 = vsyncadd %s1456_s6, %s1469_s16  ;;  %p2307_p7 = scmp.ne.s32.totalorder %s1611_s8, 0  ;;  %s1618_s30 = sshll.u32 %s2032_s22, 4 }
 0x272   : > { %s1473_s25 = scalar_lea.hbm %s2365_s5, %s1618_s30  ;;  %s1475_s9 = sshll.u32 %s315_s7, 4  ;;  %s2315_s9 = int_to_ptr.vmem [resolvable:$true] %s1475_s9 }
 0x273   : > { %s1477_s11 = sshll.u32 %s1473_s25, 4  ;;  %s1615_s14 = sshll.u32 %s2403_s26, 7  ;;  %s2317_s11 = int_to_ptr.hbm [resolvable:$true] %s1477_s11 }
 0x274   : > { %s1880_s10 = sshra.s32 %s2315_s9, 4  ;;  %s1882_s12 = sshrl.u32 %s1615_s14, 4  ;;  %s1881_s10 = int_to_ptr.vmem [resolvable:$true] %s1880_s10 }
 0x275   : > { %s1887_s3 = scalar_lea.vmem %s1881_s10, %s1882_s12  ;;  %s1978_s22 = smov [#allocation11]  }
 0x276   : > { %p1888_p11 = scmp.ne.s32.totalorder %s1881_s10, %s1887_s3  ;;  %s1891_s24 = scalar_lea.vmem %s1978_s22, 32 }
 0x277   : > { %p1893_p0 = scmp.lt.s32.totalorder %s1891_s24, %s1887_s3 }
 0x278   : > { %p1889_p10 = pnand %p1888_p11, %p2307_p7 }
 0x27a   : > { %p1890_p1 = pneg %p1889_p10 }
 0x27c   : > { %p1895_p3 = pnand %p1893_p0, %p1890_p1 }
 0x27e   : > { %1898 = shalt.err (!%p1895_p3)
}
 0x27f   : > { %s1899_s27 = sshra.s32 %s2317_s11, 4  ;;  %s1910_s8 = scalar_lea.hbm %s2365_s5, 24  ;;  %s1900_s27 = int_to_ptr.hbm [resolvable:$true] %s1899_s27 }
 0x280   : > { %s1906_s29 = scalar_lea.hbm %s1900_s27, %s1882_s12  ;;  %p1911_p4 = scmp.lt.s32.totalorder %s1900_s27, %s2365_s5 }
 0x281   : > { %p1907_p5 = scmp.ne.s32.totalorder %s1900_s27, %s1906_s29  ;;  %p1912_p12 = scmp.lt.s32.totalorder %s1910_s8, %s1906_s29 }
 0x283   : > { %p1908_p8 = pnand %p1907_p5, %p2307_p7  ;;  %p1913_p13 = por %p1912_p12, %p1911_p4 }
 0x285   : > { %p1909_p9 = pneg %p1908_p8 }
 0x287   : > { %p1914_p2 = pnand %p1913_p13, %p1909_p9 }
 0x289   : > { %1917 = shalt.err (!%p1914_p2)
}
 0x28a   : > { %s1979_s30 = smov 128   ;;  %s1980_s13 = smov 8  }
 0x28b   : > { %1483 = dma.vmem_to_hbm [thread:$0]  (%p2307_p7), %s2315_s9, %s1615_s14, %s2317_s11, %s1456_s6, %s1979_s30, %s1979_s30, %s1980_s13  }
 0x28c PF: > { %s2390_s23 = sld [smem:[#allocation18_spill]]  ;;  %s1492_s25 = sand.u32 1, %s1953_s18  }
 0x28d   : > { %p2392_p11 = scmp.ge.s32.totalorder %s1965_s21, 2  ;;  %s1493_s10 = scalar_lea.sflag [#allocation4], %s1492_s25 }
 0x292   : > { %p2391_p6 = scmp.ne.s32.totalorder %s2390_s23, 0 }
 0x294   : > { %p1654_p10 = pnand %p2392_p11, %p2391_p6 }
 0x296   : > { %p1655_p1 = pneg %p1654_p10 }
 0x298   : > { %1948 = dma.done.wait (%p1655_p1), %s1493_s10, 256  }
 0x299   : > { %1950 = vsyncadd (%p1655_p1), %s1493_s10, 4294967040  ;;  %s2393_s21 = sld [smem:[#allocation16_spill]]  ;;  %s2395_s18 = smov %s1957_s19 }
 0x29a   : > { %s2394_s17 = sld [smem:[#allocation17_spill]]  ;;  %s2396_s19 = smov %s1961_s20 }
 0x29f   : > { %p20_p0 = scmp.ge.s32.totalorder %s2393_s21, 4  }
 0x2a0   : > { %s2397_s20 = smov %s2394_s17 }
 0x2a1   :  { %22 = sbr.rel (!%p20_p0) target bundleno = 10 (0xa), region = 101 }
 0x2a6   :  { %1499 = vsyncpa [#allocation3], 1 }
 0x2a7   :  { %1501 = vsyncpa [#allocation3 + $0x1], 1 }
 0x2a8   :  { %1502 = vsyncpa [#allocation6], 1 }
 0x2a9   :  { %1503 = vsyncpa [#allocation9], 1 }
 0x2aa   :  { %1504 = vsyncpa [#allocation4], 1 }
 0x2ab   :  { %1506 = vsyncpa [#allocation4 + $0x1], 1 }

</bundles_post_ra>
